<compile_context>
chip_gen: v6e
topology: v6e:2x2x1
jax: 0.10.0
libtpu: 0.0.40
codegen_flags: <defaults>
</compile_context>

<pallas_src>
import functools

import jax
import jax.numpy as jnp
import numpy as np
from jax.experimental import pallas as pl
from jax.experimental.pallas import tpu as pltpu


def _gam_kernel(x_ref, m1_ref, b1_ref, m2_ref, b2_ref,
                g1_ref, bc1_ref, g2_ref, bc2_ref, o_ref):
    f32 = jnp.float32
    bf16 = jnp.bfloat16
    Bb, H, CW = x_ref.shape
    LH = m1_ref.shape[1]                 # lane-padded hidden width (multiple of 128)
    K = g1_ref.shape[0] // CW            # 7 (static)
    P = K // 2                           # 3 (static)

    dot = functools.partial(jnp.dot, preferred_element_type=f32)

    def sigmoid(z):                      # z is f32; exp->EUP, reciprocal->EUP
        return pl.reciprocal(1.0 + jnp.exp(-z), approx=True)

    def row_taps(a):
        """a: (Bb*H, L) -> (Bb*H, K*L): K zero-padded row-shifted copies along lanes."""
        L = a.shape[-1]
        a3 = a.reshape(Bb, H, L)
        zp = jnp.zeros((Bb, P, L), a.dtype)
        padr = jnp.concatenate([zp, a3, zp], axis=1)            # (Bb, H+2P, L)
        cat = jnp.concatenate([padr[:, ky:ky + H, :] for ky in range(K)], axis=-1)
        return cat.reshape(Bb * H, K * L)

    x = x_ref[...]                                              # (Bb, H, CW) bf16
    x2 = x.reshape(Bb * H, CW)

    # ---- channel attention: per-pixel MLP over channels (Kronecker-expanded) ----
    hid = jnp.maximum(dot(x2, m1_ref[...]) + b1_ref[...], 0.0)  # (Bb*H, LH)  f32
    att = dot(hid.astype(bf16), m2_ref[...]) + b2_ref[...]      # (Bb*H, CW)  f32
    xca = x2.astype(f32) * sigmoid(att)                         # (Bb*H, CW)  f32

    # ---- spatial attention: 7x7 conv (+BN) -> ReLU -> 7x7 conv (+BN) -> sigmoid ----
    h1 = jnp.maximum(dot(row_taps(xca.astype(bf16)), g1_ref[...]) + bc1_ref[...],
                     0.0)                                       # (Bb*H, LH)  f32
    s2 = dot(row_taps(h1.astype(bf16)), g2_ref[...]) + bc2_ref[...]   # (Bb*H, CW)
    o_ref[...] = (xca * sigmoid(s2)).reshape(Bb, H, CW).astype(o_ref.dtype)


def _batch_blocks(B):
    """2-way batch split only on v7x (2 TensorCores); single step elsewhere."""
    try:
        kind = jax.devices()[0].device_kind.lower()
    except Exception:
        return 1
    if "v7" in kind and B % 2 == 0:
        return 2
    return 1


def gam_attention(x, p, eps=1e-5):
    """GAM_Attention forward. x: (B, C, H, W) float. p: parameter dict."""
    B, C, H, W = x.shape
    W1 = np.asarray(p["W1"], np.float32)
    b1 = np.asarray(p["b1"], np.float32)
    W2 = np.asarray(p["W2"], np.float32)
    b2 = np.asarray(p["b2"], np.float32)
    Wc1 = np.asarray(p["Wc1"], np.float32)
    bc1 = np.asarray(p["bc1"], np.float32)
    Wc2 = np.asarray(p["Wc2"], np.float32)
    bc2 = np.asarray(p["bc2"], np.float32)
    g1, be1, m1, v1 = (np.asarray(p[k], np.float32) for k in ("g1", "be1", "m1", "v1"))
    g2, be2, m2, v2 = (np.asarray(p[k], np.float32) for k in ("g2", "be2", "m2", "v2"))

    Cm = W1.shape[0]
    CW, CmW = C * W, Cm * W
    LH = ((CmW + 127) // 128) * 128      # lane-padded hidden width
    K = Wc1.shape[-1]                    # 7
    P = K // 2                           # 3

    # ---- fold inference BatchNorm into conv weights / biases (host side) ----
    s1 = g1 / np.sqrt(v1 + eps)
    Wc1f = Wc1 * s1[:, None, None, None]
    bc1f = (bc1 - m1) * s1 + be1
    s2 = g2 / np.sqrt(v2 + eps)
    Wc2f = Wc2 * s2[:, None, None, None]
    bc2f = (bc2 - m2) * s2 + be2

    # ---- host-precomposed structured operands (lane index = c*W + w) ----
    eyeW = np.eye(W, dtype=np.float32)
    M1 = np.kron(W1.T, eyeW)                          # (C*W, Cm*W)
    M2 = np.kron(W2.T, eyeW)                          # (Cm*W, C*W)

    G1 = np.zeros((K, CW, CmW), np.float32)           # per row-tap: width taps x channel mix
    G2 = np.zeros((K, CmW, CW), np.float32)
    for ky in range(K):
        for kx in range(K):
            for xo in range(W):
                xi = xo + kx - P
                if 0 <= xi < W:
                    G1[ky, xi::W, xo::W] = Wc1f[:, :, ky, kx].T   # (C, Cm) block
                    G2[ky, xi::W, xo::W] = Wc2f[:, :, ky, kx].T   # (Cm, C) block

    # pad hidden lanes to LH and stack the K taps along the contraction dim
    M1p = np.zeros((CW, LH), np.float32); M1p[:, :CmW] = M1
    M2p = np.zeros((LH, CW), np.float32); M2p[:CmW, :] = M2
    G1s = np.zeros((K * CW, LH), np.float32)
    G2s = np.zeros((K * LH, CW), np.float32)
    for ky in range(K):
        G1s[ky * CW:(ky + 1) * CW, :CmW] = G1[ky]
        G2s[ky * LH:ky * LH + CmW, :] = G2[ky]

    b1row = np.zeros((1, LH), np.float32); b1row[0, :CmW] = np.repeat(b1, W)
    bc1row = np.zeros((1, LH), np.float32); bc1row[0, :CmW] = np.repeat(bc1f, W)
    b2row = np.repeat(b2, W)[None, :].astype(np.float32)           # (1, C*W)
    bc2row = np.repeat(bc2f, W)[None, :].astype(np.float32)        # (1, C*W)

    # lane-dense activation layout: (B, H, C*W); bf16 at the kernel boundary.
    # (Ideally the surrounding model keeps this layout to avoid the relayout tax.)
    xr = jnp.transpose(x.astype(jnp.float32), (0, 2, 1, 3)).reshape(B, H, CW)
    xr = xr.astype(jnp.bfloat16)

    nb = _batch_blocks(B)
    Bb = B // nb
    bf = jnp.bfloat16

    grid_spec = pltpu.PrefetchScalarGridSpec(
        num_scalar_prefetch=0,
        grid=(nb,),
        in_specs=[
            pl.BlockSpec((Bb, H, CW), lambda i: (i, 0, 0)),      # activations
            pl.BlockSpec((CW, LH), lambda i: (0, 0)),            # M1 (padded)
            pl.BlockSpec((1, LH), lambda i: (0, 0)),             # b1 row
            pl.BlockSpec((LH, CW), lambda i: (0, 0)),            # M2 (padded)
            pl.BlockSpec((1, CW), lambda i: (0, 0)),             # b2 row
            pl.BlockSpec((K * CW, LH), lambda i: (0, 0)),        # Gstack1
            pl.BlockSpec((1, LH), lambda i: (0, 0)),             # conv1+BN bias row
            pl.BlockSpec((K * LH, CW), lambda i: (0, 0)),        # Gstack2
            pl.BlockSpec((1, CW), lambda i: (0, 0)),             # conv2+BN bias row
        ],
        out_specs=pl.BlockSpec((Bb, H, CW), lambda i: (i, 0, 0)),
    )

    out = pl.pallas_call(
        _gam_kernel,
        out_shape=jax.ShapeDtypeStruct((B, H, CW), jnp.float32),
        grid_spec=grid_spec,
        compiler_params=pltpu.CompilerParams(dimension_semantics=("parallel",)),
    )(xr,
      jnp.asarray(M1p, bf), jnp.asarray(b1row),
      jnp.asarray(M2p, bf), jnp.asarray(b2row),
      jnp.asarray(G1s, bf), jnp.asarray(bc1row),
      jnp.asarray(G2s, bf), jnp.asarray(bc2row))

    return out.reshape(B, H, C, W).transpose(0, 2, 1, 3).astype(x.dtype)


def _reference(x, p, eps=1e-5):
    """Pure-JAX (XLA) reference mirroring the PyTorch module (BN in eval mode)."""
    prec = jax.lax.Precision.HIGHEST
    B, C, H, W = x.shape
    xp = jnp.transpose(x, (0, 2, 3, 1)).reshape(B, H * W, C)
    hid = jnp.maximum(jnp.einsum("bnc,mc->bnm", xp, p["W1"], precision=prec) + p["b1"], 0.0)
    att = jnp.einsum("bnm,cm->bnc", hid, p["W2"], precision=prec) + p["b2"]
    att = jnp.transpose(att.reshape(B, H, W, C), (0, 3, 1, 2))
    xca = x * jax.nn.sigmoid(att)

    def conv_bn(z, wgt, bias, gamma, beta, mean, var):
        y = jax.lax.conv_general_dilated(
            z, wgt, window_strides=(1, 1), padding=((3, 3), (3, 3)),
            dimension_numbers=("NCHW", "OIHW", "NCHW"), precision=prec)
        y = y + bias[None, :, None, None]
        scale = gamma / jnp.sqrt(var + eps)
        return (y - mean[None, :, None, None]) * scale[None, :, None, None] \
            + beta[None, :, None, None]

    h1 = jnp.maximum(conv_bn(xca, p["Wc1"], p["bc1"], p["g1"], p["be1"], p["m1"], p["v1"]), 0.0)
    y2 = conv_bn(h1, p["Wc2"], p["bc2"], p["g2"], p["be2"], p["m2"], p["v2"])
    return xca * jax.nn.sigmoid(y2)


def _make_params(key, C, rate):
    Cm = C // rate
    ks = jax.random.split(key, 16)

    def n(k, shape, scale=1.0):
        return (scale * jax.random.normal(k, shape)).astype(jnp.float32)

    return dict(
        W1=n(ks[0], (Cm, C), 1.0 / np.sqrt(C)),
        b1=n(ks[1], (Cm,), 0.1),
        W2=n(ks[2], (C, Cm), 1.0 / np.sqrt(Cm)),
        b2=n(ks[3], (C,), 0.1),
        Wc1=n(ks[4], (Cm, C, 7, 7), 1.0 / np.sqrt(C * 49)),
        bc1=n(ks[5], (Cm,), 0.1),
        g1=(1.0 + 0.1 * jax.random.normal(ks[6], (Cm,))).astype(jnp.float32),
        be1=n(ks[7], (Cm,), 0.1),
        m1=n(ks[8], (Cm,), 0.1),
        v1=(0.5 + jax.random.uniform(ks[9], (Cm,))).astype(jnp.float32),
        Wc2=n(ks[10], (C, Cm, 7, 7), 1.0 / np.sqrt(Cm * 49)),
        bc2=n(ks[11], (C,), 0.1),
        g2=(1.0 + 0.1 * jax.random.normal(ks[12], (C,))).astype(jnp.float32),
        be2=n(ks[13], (C,), 0.1),
        m2=n(ks[14], (C,), 0.1),
        v2=(0.5 + jax.random.uniform(ks[15], (C,))).astype(jnp.float32),
    )


if __name__ == "__main__":
    B, C, H, W, rate = 2, 8, 16, 16, 4     # C*W = 128 -> exactly one lane tile
    key = jax.random.PRNGKey(0)
    kx, kp = jax.random.split(key)
    x = jax.random.normal(kx, (B, C, H, W), dtype=jnp.float32)
    params = _make_params(kp, C, rate)

    out = gam_attention(x, params)
    jax.block_until_ready(out)

    ref = _reference(x, params)
    max_err = float(jnp.max(jnp.abs(out - ref)))
    assert out.shape == (B, C, H, W)
    # Kernel uses bf16 weights/activations on the MXU (DEFAULT precision) while
    # the reference runs at Precision.HIGHEST; tolerance absorbs the bf16 gap.
    assert jnp.allclose(out, ref, atol=3e-2, rtol=3e-2), f"mismatch: max |err| = {max_err}"
    print("KERNEL_OK")
</pallas_src>

<mosaic_0001>
module attributes {stable_mosaic.version = 11 : i64} {
  func.func @_gam_kernel(%arg0: i32, %arg1: memref<2x16x128xbf16, #tpu.memory_space<vmem>>, %arg2: memref<128x128xbf16, #tpu.memory_space<vmem>>, %arg3: memref<1x128xf32, #tpu.memory_space<vmem>>, %arg4: memref<128x128xbf16, #tpu.memory_space<vmem>>, %arg5: memref<1x128xf32, #tpu.memory_space<vmem>>, %arg6: memref<896x128xbf16, #tpu.memory_space<vmem>>, %arg7: memref<1x128xf32, #tpu.memory_space<vmem>>, %arg8: memref<896x128xbf16, #tpu.memory_space<vmem>>, %arg9: memref<1x128xf32, #tpu.memory_space<vmem>>, %arg10: memref<2x16x128xf32, #tpu.memory_space<vmem>>) attributes {dimension_semantics = [#tpu.dimension_semantics<parallel>], iteration_bounds = array<i64: 1>, scalar_prefetch = 0 : i64, scratch_operands = 0 : i64, tpu.core_type = #tpu.core_type<tc>, window_params = [{transform_indices = @transform_0, window_bounds = array<i64: 2, 16, 128>}, {pipeline_mode = #tpu.pipeline_mode<synchronous>, transform_indices = @transform_1, window_bounds = array<i64: 128, 128>}, {pipeline_mode = #tpu.pipeline_mode<synchronous>, transform_indices = @transform_2, window_bounds = array<i64: 1, 128>}, {pipeline_mode = #tpu.pipeline_mode<synchronous>, transform_indices = @transform_3, window_bounds = array<i64: 128, 128>}, {pipeline_mode = #tpu.pipeline_mode<synchronous>, transform_indices = @transform_4, window_bounds = array<i64: 1, 128>}, {pipeline_mode = #tpu.pipeline_mode<synchronous>, transform_indices = @transform_5, window_bounds = array<i64: 896, 128>}, {pipeline_mode = #tpu.pipeline_mode<synchronous>, transform_indices = @transform_6, window_bounds = array<i64: 1, 128>}, {pipeline_mode = #tpu.pipeline_mode<synchronous>, transform_indices = @transform_7, window_bounds = array<i64: 896, 128>}, {pipeline_mode = #tpu.pipeline_mode<synchronous>, transform_indices = @transform_8, window_bounds = array<i64: 1, 128>}, {transform_indices = @transform_9, window_bounds = array<i64: 2, 16, 128>}]} {
    %c0 = arith.constant 0 : index
    %c0_0 = arith.constant 0 : index
    %c0_1 = arith.constant 0 : index
    %0 = vector.load %arg1[%c0, %c0_0, %c0_1] : memref<2x16x128xbf16, #tpu.memory_space<vmem>>, vector<2x16x128xbf16>
    %1 = vector.shape_cast %0 : vector<2x16x128xbf16> to vector<32x128xbf16>
    %c0_2 = arith.constant 0 : index
    %c0_3 = arith.constant 0 : index
    %2 = vector.load %arg2[%c0_2, %c0_3] : memref<128x128xbf16, #tpu.memory_space<vmem>>, vector<128x128xbf16>
    %cst = arith.constant dense<0.000000e+00> : vector<32x128xf32>
    %3 = tpu.matmul %1, %2, %cst {dimension_numbers = #tpu.dot_dimension_numbers<[1], [0], [0], [1], [0, 0, 1, 1], [], []>} : vector<32x128xbf16>, vector<128x128xbf16>, vector<32x128xf32> -> vector<32x128xf32>
    %c0_4 = arith.constant 0 : index
    %c0_5 = arith.constant 0 : index
    %4 = vector.load %arg3[%c0_4, %c0_5] : memref<1x128xf32, #tpu.memory_space<vmem>>, vector<1x128xf32>
    %5 = vector.broadcast %4 : vector<1x128xf32> to vector<32x128xf32>
    %6 = arith.addf %3, %5 : vector<32x128xf32>
    %cst_6 = arith.constant 0.000000e+00 : f32
    %7 = vector.broadcast %cst_6 : f32 to vector<32x128xf32>
    %8 = arith.maximumf %6, %7 : vector<32x128xf32>
    %9 = arith.truncf %8 : vector<32x128xf32> to vector<32x128xbf16>
    %c0_7 = arith.constant 0 : index
    %c0_8 = arith.constant 0 : index
    %10 = vector.load %arg4[%c0_7, %c0_8] : memref<128x128xbf16, #tpu.memory_space<vmem>>, vector<128x128xbf16>
    %cst_9 = arith.constant dense<0.000000e+00> : vector<32x128xf32>
    %11 = tpu.matmul %9, %10, %cst_9 {dimension_numbers = #tpu.dot_dimension_numbers<[1], [0], [0], [1], [0, 0, 1, 1], [], []>} : vector<32x128xbf16>, vector<128x128xbf16>, vector<32x128xf32> -> vector<32x128xf32>
    %c0_10 = arith.constant 0 : index
    %c0_11 = arith.constant 0 : index
    %12 = vector.load %arg5[%c0_10, %c0_11] : memref<1x128xf32, #tpu.memory_space<vmem>>, vector<1x128xf32>
    %13 = vector.broadcast %12 : vector<1x128xf32> to vector<32x128xf32>
    %14 = arith.addf %11, %13 : vector<32x128xf32>
    %15 = arith.extf %1 : vector<32x128xbf16> to vector<32x128xf32>
    %cst_12 = arith.constant 0.000000e+00 : f32
    %16 = vector.broadcast %cst_12 : f32 to vector<32x128xf32>
    %17 = arith.subf %16, %14 : vector<32x128xf32>
    %18 = math.exp %17 : vector<32x128xf32>
    %cst_13 = arith.constant 1.000000e+00 : f32
    %19 = vector.broadcast %cst_13 : f32 to vector<32x128xf32>
    %20 = arith.addf %19, %18 : vector<32x128xf32>
    %21 = tpu.reciprocal %20 {approx = true} : vector<32x128xf32> -> vector<32x128xf32>
    %22 = arith.mulf %15, %21 : vector<32x128xf32>
    %23 = arith.truncf %22 : vector<32x128xf32> to vector<32x128xbf16>
    %24 = vector.shape_cast %23 : vector<32x128xbf16> to vector<2x16x128xbf16>
    %cst_14 = arith.constant 0.000000e+00 : bf16
    %25 = vector.broadcast %cst_14 : bf16 to vector<2x3x128xbf16>
    %26 = tpu.concatenate %25, %24, %25 in 1 : vector<2x3x128xbf16>, vector<2x16x128xbf16>, vector<2x3x128xbf16> -> vector<2x22x128xbf16>
    %27 = vector.extract_strided_slice %26 {offsets = [0, 0, 0], sizes = [2, 16, 128], strides = [1, 1, 1]} : vector<2x22x128xbf16> to vector<2x16x128xbf16>
    %28 = vector.extract_strided_slice %26 {offsets = [0, 1, 0], sizes = [2, 16, 128], strides = [1, 1, 1]} : vector<2x22x128xbf16> to vector<2x16x128xbf16>
    %29 = vector.extract_strided_slice %26 {offsets = [0, 2, 0], sizes = [2, 16, 128], strides = [1, 1, 1]} : vector<2x22x128xbf16> to vector<2x16x128xbf16>
    %30 = vector.extract_strided_slice %26 {offsets = [0, 3, 0], sizes = [2, 16, 128], strides = [1, 1, 1]} : vector<2x22x128xbf16> to vector<2x16x128xbf16>
    %31 = vector.extract_strided_slice %26 {offsets = [0, 4, 0], sizes = [2, 16, 128], strides = [1, 1, 1]} : vector<2x22x128xbf16> to vector<2x16x128xbf16>
    %32 = vector.extract_strided_slice %26 {offsets = [0, 5, 0], sizes = [2, 16, 128], strides = [1, 1, 1]} : vector<2x22x128xbf16> to vector<2x16x128xbf16>
    %33 = vector.extract_strided_slice %26 {offsets = [0, 6, 0], sizes = [2, 16, 128], strides = [1, 1, 1]} : vector<2x22x128xbf16> to vector<2x16x128xbf16>
    %34 = tpu.concatenate %27, %28, %29, %30, %31, %32, %33 in 2 : vector<2x16x128xbf16>, vector<2x16x128xbf16>, vector<2x16x128xbf16>, vector<2x16x128xbf16>, vector<2x16x128xbf16>, vector<2x16x128xbf16>, vector<2x16x128xbf16> -> vector<2x16x896xbf16>
    %35 = vector.shape_cast %34 : vector<2x16x896xbf16> to vector<32x896xbf16>
    %c0_15 = arith.constant 0 : index
    %c0_16 = arith.constant 0 : index
    %36 = vector.load %arg6[%c0_15, %c0_16] : memref<896x128xbf16, #tpu.memory_space<vmem>>, vector<896x128xbf16>
    %cst_17 = arith.constant dense<0.000000e+00> : vector<32x128xf32>
    %37 = tpu.matmul %35, %36, %cst_17 {dimension_numbers = #tpu.dot_dimension_numbers<[1], [0], [0], [1], [0, 0, 1, 1], [], []>} : vector<32x896xbf16>, vector<896x128xbf16>, vector<32x128xf32> -> vector<32x128xf32>
    %c0_18 = arith.constant 0 : index
    %c0_19 = arith.constant 0 : index
    %38 = vector.load %arg7[%c0_18, %c0_19] : memref<1x128xf32, #tpu.memory_space<vmem>>, vector<1x128xf32>
    %39 = vector.broadcast %38 : vector<1x128xf32> to vector<32x128xf32>
    %40 = arith.addf %37, %39 : vector<32x128xf32>
    %cst_20 = arith.constant 0.000000e+00 : f32
    %41 = vector.broadcast %cst_20 : f32 to vector<32x128xf32>
    %42 = arith.maximumf %40, %41 : vector<32x128xf32>
    %43 = arith.truncf %42 : vector<32x128xf32> to vector<32x128xbf16>
    %44 = vector.shape_cast %43 : vector<32x128xbf16> to vector<2x16x128xbf16>
    %cst_21 = arith.constant 0.000000e+00 : bf16
    %45 = vector.broadcast %cst_21 : bf16 to vector<2x3x128xbf16>
    %46 = tpu.concatenate %45, %44, %45 in 1 : vector<2x3x128xbf16>, vector<2x16x128xbf16>, vector<2x3x128xbf16> -> vector<2x22x128xbf16>
    %47 = vector.extract_strided_slice %46 {offsets = [0, 0, 0], sizes = [2, 16, 128], strides = [1, 1, 1]} : vector<2x22x128xbf16> to vector<2x16x128xbf16>
    %48 = vector.extract_strided_slice %46 {offsets = [0, 1, 0], sizes = [2, 16, 128], strides = [1, 1, 1]} : vector<2x22x128xbf16> to vector<2x16x128xbf16>
    %49 = vector.extract_strided_slice %46 {offsets = [0, 2, 0], sizes = [2, 16, 128], strides = [1, 1, 1]} : vector<2x22x128xbf16> to vector<2x16x128xbf16>
    %50 = vector.extract_strided_slice %46 {offsets = [0, 3, 0], sizes = [2, 16, 128], strides = [1, 1, 1]} : vector<2x22x128xbf16> to vector<2x16x128xbf16>
    %51 = vector.extract_strided_slice %46 {offsets = [0, 4, 0], sizes = [2, 16, 128], strides = [1, 1, 1]} : vector<2x22x128xbf16> to vector<2x16x128xbf16>
    %52 = vector.extract_strided_slice %46 {offsets = [0, 5, 0], sizes = [2, 16, 128], strides = [1, 1, 1]} : vector<2x22x128xbf16> to vector<2x16x128xbf16>
    %53 = vector.extract_strided_slice %46 {offsets = [0, 6, 0], sizes = [2, 16, 128], strides = [1, 1, 1]} : vector<2x22x128xbf16> to vector<2x16x128xbf16>
    %54 = tpu.concatenate %47, %48, %49, %50, %51, %52, %53 in 2 : vector<2x16x128xbf16>, vector<2x16x128xbf16>, vector<2x16x128xbf16>, vector<2x16x128xbf16>, vector<2x16x128xbf16>, vector<2x16x128xbf16>, vector<2x16x128xbf16> -> vector<2x16x896xbf16>
    %55 = vector.shape_cast %54 : vector<2x16x896xbf16> to vector<32x896xbf16>
    %c0_22 = arith.constant 0 : index
    %c0_23 = arith.constant 0 : index
    %56 = vector.load %arg8[%c0_22, %c0_23] : memref<896x128xbf16, #tpu.memory_space<vmem>>, vector<896x128xbf16>
    %cst_24 = arith.constant dense<0.000000e+00> : vector<32x128xf32>
    %57 = tpu.matmul %55, %56, %cst_24 {dimension_numbers = #tpu.dot_dimension_numbers<[1], [0], [0], [1], [0, 0, 1, 1], [], []>} : vector<32x896xbf16>, vector<896x128xbf16>, vector<32x128xf32> -> vector<32x128xf32>
    %c0_25 = arith.constant 0 : index
    %c0_26 = arith.constant 0 : index
    %58 = vector.load %arg9[%c0_25, %c0_26] : memref<1x128xf32, #tpu.memory_space<vmem>>, vector<1x128xf32>
    %59 = vector.broadcast %58 : vector<1x128xf32> to vector<32x128xf32>
    %60 = arith.addf %57, %59 : vector<32x128xf32>
    %cst_27 = arith.constant 0.000000e+00 : f32
    %61 = vector.broadcast %cst_27 : f32 to vector<32x128xf32>
    %62 = arith.subf %61, %60 : vector<32x128xf32>
    %63 = math.exp %62 : vector<32x128xf32>
    %cst_28 = arith.constant 1.000000e+00 : f32
    %64 = vector.broadcast %cst_28 : f32 to vector<32x128xf32>
    %65 = arith.addf %64, %63 : vector<32x128xf32>
    %66 = tpu.reciprocal %65 {approx = true} : vector<32x128xf32> -> vector<32x128xf32>
    %67 = arith.mulf %22, %66 : vector<32x128xf32>
    %68 = vector.shape_cast %67 : vector<32x128xf32> to vector<2x16x128xf32>
    %c0_29 = arith.constant 0 : index
    %c0_30 = arith.constant 0 : index
    %c0_31 = arith.constant 0 : index
    %69 = vector.load %arg10[%c0_29, %c0_30, %c0_31] : memref<2x16x128xf32, #tpu.memory_space<vmem>>, vector<2x16x128xf32>
    tpu.vector_store %arg10[%c0_29, %c0_30, %c0_31], %68 {strides = array<i32>} : memref<2x16x128xf32, #tpu.memory_space<vmem>>, vector<2x16x128xf32>,
    return
  }
  func.func @transform_0(%arg0: i32) -> (i32, i32, i32) {
    %c0_i32 = arith.constant 0 : i32
    %c0_i32_0 = arith.constant 0 : i32
    %c0_i32_1 = arith.constant 0 : i32
    return %arg0, %c0_i32, %c0_i32_0 : i32, i32, i32
  }
  func.func @transform_1(%arg0: i32) -> (i32, i32) {
    %c0_i32 = arith.constant 0 : i32
    %c0_i32_0 = arith.constant 0 : i32
    %c0_i32_1 = arith.constant 0 : i32
    return %c0_i32, %c0_i32_0 : i32, i32
  }
  func.func @transform_2(%arg0: i32) -> (i32, i32) {
    %c0_i32 = arith.constant 0 : i32
    %c0_i32_0 = arith.constant 0 : i32
    %c0_i32_1 = arith.constant 0 : i32
    return %c0_i32, %c0_i32_0 : i32, i32
  }
  func.func @transform_3(%arg0: i32) -> (i32, i32) {
    %c0_i32 = arith.constant 0 : i32
    %c0_i32_0 = arith.constant 0 : i32
    %c0_i32_1 = arith.constant 0 : i32
    return %c0_i32, %c0_i32_0 : i32, i32
  }
  func.func @transform_4(%arg0: i32) -> (i32, i32) {
    %c0_i32 = arith.constant 0 : i32
    %c0_i32_0 = arith.constant 0 : i32
    %c0_i32_1 = arith.constant 0 : i32
    return %c0_i32, %c0_i32_0 : i32, i32
  }
  func.func @transform_5(%arg0: i32) -> (i32, i32) {
    %c0_i32 = arith.constant 0 : i32
    %c0_i32_0 = arith.constant 0 : i32
    %c0_i32_1 = arith.constant 0 : i32
    return %c0_i32, %c0_i32_0 : i32, i32
  }
  func.func @transform_6(%arg0: i32) -> (i32, i32) {
    %c0_i32 = arith.constant 0 : i32
    %c0_i32_0 = arith.constant 0 : i32
    %c0_i32_1 = arith.constant 0 : i32
    return %c0_i32, %c0_i32_0 : i32, i32
  }
  func.func @transform_7(%arg0: i32) -> (i32, i32) {
    %c0_i32 = arith.constant 0 : i32
    %c0_i32_0 = arith.constant 0 : i32
    %c0_i32_1 = arith.constant 0 : i32
    return %c0_i32, %c0_i32_0 : i32, i32
  }
  func.func @transform_8(%arg0: i32) -> (i32, i32) {
    %c0_i32 = arith.constant 0 : i32
    %c0_i32_0 = arith.constant 0 : i32
    %c0_i32_1 = arith.constant 0 : i32
    return %c0_i32, %c0_i32_0 : i32, i32
  }
  func.func @transform_9(%arg0: i32) -> (i32, i32, i32) {
    %c0_i32 = arith.constant 0 : i32
    %c0_i32_0 = arith.constant 0 : i32
    %c0_i32_1 = arith.constant 0 : i32
    return %arg0, %c0_i32, %c0_i32_0 : i32, i32, i32
  }
}

</mosaic_0001>

<bundles_post_ra>
// kernel: tpu_custom_call.1
= control target key start
LH: loop header
LB: loop body
LE: loop exit
PB: predicated region body
PF: predicated region fallthrough
CT: control target
= control target key end

     0   :  { %14 = vsyncpa [#allocation3], 0  ;;  %s2987_s0 = inlined_call_operand.hbm [shape: bf16[2,16,128], index: 0, kind: input, shape index: {}]   ;;  %s2988_s1 = inlined_call_operand.hbm [shape: bf16[128,128], index: 1, kind: input, shape index: {}]   ;;  %s2989_s2 = inlined_call_operand.vmem [shape: f32[1,128], index: 2, kind: input, shape index: {}]   ;;  %s2990_s3 = inlined_call_operand.hbm [shape: bf16[128,128], index: 3, kind: input, shape index: {}]   ;;  %s2991_s4 = inlined_call_operand.vmem [shape: f32[1,128], index: 4, kind: input, shape index: {}]   ;;  %s2992_s5 = inlined_call_operand.hbm [shape: bf16[896,128], index: 5, kind: input, shape index: {}]   ;;  %s2993_s6 = inlined_call_operand.vmem [shape: f32[1,128], index: 6, kind: input, shape index: {}]   ;;  %s2994_s7 = inlined_call_operand.hbm [shape: bf16[896,128], index: 7, kind: input, shape index: {}]   ;;  %s2995_s8 = inlined_call_operand.vmem [shape: f32[1,128], index: 8, kind: input, shape index: {}]   ;;  %s2996_s9 = inlined_call_operand.hbm [shape: f32[2,16,128], index: 9, kind: output, shape index: {}]  }
   0x1   :  { %15 = vsyncpa [#allocation6], 0 }
   0x2   :  { %16 = vsyncpa [#allocation9], 0 }
   0x3   :  { %17 = vsyncpa [#allocation4], 0  ;;  %s2706_s30 = smov [#allocation5]   ;;  %s2707_s11 = smov [#allocation8]  }
   0x4   :  { %s35_s10 = sshll.u32 %s2706_s30, 4  ;;  %s63_s12 = sshll.u32 %s2707_s11, 4  ;;  %s36_s10 = int_to_ptr.vmem [resolvable:$true] %s35_s10  ;;  %s64_s12 = int_to_ptr.vmem [resolvable:$true] %s63_s12 }
   0x5   :  { %s2586_s13 = scalar_lea.vmem %s36_s10, 1024  ;;  %p2591_p1 = scmp.lt.s32.totalorder %s36_s10, %s36_s10 }
   0x6   :  { %p2587_p0 = scmp.ne.s32.totalorder %s36_s10, %s2586_s13  ;;  %p2592_p2 = scmp.lt.s32.totalorder %s2586_s13, %s2586_s13 }
   0x8   :  { %p2593_p3 = por %p2592_p2, %p2591_p1 }
   0xa   :  { %p2594_p4 = pnand %p2593_p3, %p2587_p0 }
   0xc   :  { %2597 = shalt.err (!%p2594_p4)
}
   0xd   :  { %s2708_s14 = smov 64   ;;  %s2709_s15 = smov 4  }
   0xe   :  { %41 = dma.hbm_to_vmem [thread:$0]  %s2988_s1, 1024, %s36_s10, [#allocation6], %s2708_s14, %s2708_s14, %s2709_s15  }
   0xf   :  { %s2606_s18 = scalar_lea.vmem %s64_s12, 7168  ;;  %p2611_p6 = scmp.lt.s32.totalorder %s64_s12, %s64_s12 }
  0x10   :  { %p2607_p5 = scmp.ne.s32.totalorder %s64_s12, %s2606_s18  ;;  %p2612_p7 = scmp.lt.s32.totalorder %s2606_s18, %s2606_s18 }
  0x12   :  { %p2613_p8 = por %p2612_p7, %p2611_p6 }
  0x14   :  { %p2614_p9 = pnand %p2613_p8, %p2607_p5 }
  0x16   :  { %2617 = shalt.err (!%p2614_p9)
}
  0x17   :  { %69 = dma.hbm_to_vmem [thread:$0]  %s2992_s5, 7168, %s64_s12, [#allocation9], %s2708_s14, %s2708_s14, %s2709_s15  }
  0x18   :  { %s2710_s21 = smov [#allocation2]   ;;  %s2711_s23 = smov [#allocation7]  }
  0x19   :  { %s23_s22 = sshll.u32 %s2710_s21, 4  ;;  %s49_s24 = sshll.u32 %s2711_s23, 4  ;;  %s24_s22 = int_to_ptr.vmem [resolvable:$true] %s23_s22  ;;  %s50_s24 = int_to_ptr.vmem [resolvable:$true] %s49_s24 }
  0x1a   :  { %s2626_s1 = scalar_lea.vmem %s24_s22, 256  ;;  %p2631_p11 = scmp.lt.s32.totalorder %s24_s22, %s24_s22 }
  0x1b   :  { %p2627_p10 = scmp.ne.s32.totalorder %s24_s22, %s2626_s1  ;;  %p2632_p12 = scmp.lt.s32.totalorder %s2626_s1, %s2626_s1 }
  0x1d   :  { %p2633_p13 = por %p2632_p12, %p2631_p11 }
  0x1f   :  { %p2634_p0 = pnand %p2633_p13, %p2627_p10 }
  0x21   :  { %2637 = shalt.err (!%p2634_p0)
}
  0x22   :  { %29 = dma.hbm_to_vmem [thread:$0]  %s2987_s0, 256, %s24_s22, [#allocation3], %s2708_s14, %s2708_s14, %s2709_s15  }
  0x23   :  { %s2646_s5 = scalar_lea.vmem %s50_s24, 1024  ;;  %p2651_p2 = scmp.lt.s32.totalorder %s50_s24, %s50_s24 }
  0x24   :  { %p2647_p1 = scmp.ne.s32.totalorder %s50_s24, %s2646_s5  ;;  %p2652_p3 = scmp.lt.s32.totalorder %s2646_s5, %s2646_s5 }
  0x26   :  { %p2653_p4 = por %p2652_p3, %p2651_p2 }
  0x28   :  { %p2654_p5 = pnand %p2653_p4, %p2647_p1 }
  0x2a   :  { %2657 = shalt.err (!%p2654_p5)
}
  0x2b   :  { %55 = dma.hbm_to_vmem [thread:$0]  %s2990_s3, 1024, %s50_s24, [#allocation6], %s2708_s14, %s2708_s14, %s2709_s15  }
  0x2c   :  { %s2712_s29 = smov [#allocation10]  }
  0x2d   :  { %s77_s30 = sshll.u32 %s2712_s29, 4  ;;  %s78_s30 = int_to_ptr.vmem [resolvable:$true] %s77_s30 }
  0x2e   :  { %s2666_s10 = scalar_lea.vmem %s78_s30, 7168  ;;  %p2671_p7 = scmp.lt.s32.totalorder %s78_s30, %s78_s30 }
  0x2f   :  { %p2667_p6 = scmp.ne.s32.totalorder %s78_s30, %s2666_s10  ;;  %p2672_p8 = scmp.lt.s32.totalorder %s2666_s10, %s2666_s10 }
  0x31   :  { %p2673_p9 = por %p2672_p8, %p2671_p7 }
  0x33   :  { %p2674_p10 = pnand %p2673_p9, %p2667_p6 }
  0x35   :  { %2677 = shalt.err (!%p2674_p10)
}
  0x36   :  { %83 = dma.hbm_to_vmem [thread:$0]  %s2994_s7, 7168, %s78_s30, [#allocation9], %s2708_s14, %s2708_s14, %s2709_s15  }
  0x37   :  { %2698 = dma.done.wait [#allocation3], 256  }
  0x38   :  { %2699 = vsyncadd [#allocation3], 4294967040 }
  0x39   :  { %2700 = dma.done.wait [#allocation6], 2048  }
  0x3a   :  { %2701 = vsyncadd [#allocation6], 4294965248 }
  0x3b   :  { %2702 = dma.done.wait [#allocation9], 14336  }
  0x3c   :  { %2703 = vsyncadd [#allocation9], 4294952960  ;;  %v2414_v0 = vld [vmem:[#allocation5 + $0x38] sm:$0xff]   ;;  %v2415_v1 = vld [vmem:[#allocation5 + $0x30] sm:$0xff]   ;;  %vm412_vm0 = vcmask 1041408   ;;  %vm450_vm5 = vcmask 1046528  }
  0x3d   :  { %2324 = vmatprep.subr.bf16.mxu0 %v2414_v0  ;;  %v2416_v2 = vld [vmem:[#allocation5 + $0x28] sm:$0xff]   ;;  %v2417_v3 = vld [vmem:[#allocation5 + $0x20] sm:$0xff]   ;;  %v2796_v4 = vld [vmem:[#allocation2] sm:$0xff]   ;;  %vm413_vm1 = vsmask.f32 1280  ;;  %vm506_vm7 = vcmask 1044480  }
  0x3e   :  { %2325 = vmatpush3.bf16.msra.mxu0 %v2414_v0  ;;  %v2424_v5 = vld [vmem:[#allocation7 + $0x38] sm:$0xff]   ;;  %v2425_v6 = vld [vmem:[#allocation7 + $0x30] sm:$0xff]   ;;  %2340 = vmatprep.mubr.bf16.mxu0 %v2796_v4  ;;  %v2426_v8 = vld [vmem:[#allocation7 + $0x28] sm:$0xff]   ;;  %vm419_vm3 = vsmask.f32 7424  ;;  %vm480_vm8 = vcmask 1045504  }
  0x3f   :  { %2326 = vmatprep.subr.bf16.mxu0 %v2415_v1  ;;  %v2418_v7 = vld [vmem:[#allocation5 + $0x18] sm:$0xff]   ;;  %2344 = vmatprep.subr.bf16.mxu1 %v2424_v5  ;;  %v2419_v9 = vld [vmem:[#allocation5 + $0x10] sm:$0xff]   ;;  %v2427_v10 = vld [vmem:[#allocation7 + $0x20] sm:$0xff]   ;;  %vm459_vm4 = vsmask.f32 6400 }
  0x40   :  { %2345 = vmatpush3.bf16.msra.mxu1 %v2424_v5  ;;  %v2420_v11 = vld [vmem:[#allocation5 + $0x8] sm:$0xff]   ;;  %v2428_v12 = vld [vmem:[#allocation7 + $0x18] sm:$0xff]   ;;  %v2421_v13 = vld [vmem:[#allocation5] sm:$0xff]   ;;  %vm489_vm6 = vsmask.f32 5376 }
  0x41   :  { %2346 = vmatprep.subr.bf16.mxu1 %v2425_v6  ;;  %v2799_v14 = vld [vmem:[#allocation2 + $0x8] sm:$0xff]   ;;  %v2429_v15 = vld [vmem:[#allocation7 + $0x10] sm:$0xff]   ;;  %v2430_v16 = vld [vmem:[#allocation7 + $0x8] sm:$0xff]  }
  0x42   :  { %2327 = vmatpush3.bf16.msra.mxu0 %v2415_v1  ;;  %v2431_v17 = vld [vmem:[#allocation7] sm:$0xff]   ;;  %v1982_v20 = vld [vmem:[%s2989_s2] ss:$0 sm:$0xff]  ;;  %v2432_v33 = vld [vmem:[#allocation8 + $0x78] sm:$0xff]  }
  0x43   :  { %2328 = vmatprep.subr.bf16.mxu0 %v2416_v2  ;;  %v2433_v34 = vld [vmem:[#allocation8 + $0xf8] sm:$0xff]   ;;  %v2436_v37 = vld [vmem:[#allocation8 + $0x70] sm:$0xff]   ;;  %v2440_v41 = vld [vmem:[#allocation8 + $0x68] sm:$0xff]  }
  0x44   :  { %2347 = vmatpush3.bf16.msra.mxu1 %v2425_v6  ;;  %v2434_v35 = vld [vmem:[#allocation8 + $0x38] sm:$0xff]   ;;  %v2437_v38 = vld [vmem:[#allocation8 + $0xf0] sm:$0xff]   ;;  %v2441_v42 = vld [vmem:[#allocation8 + $0xe8] sm:$0xff]  }
  0x45   :  { %2348 = vmatprep.subr.bf16.mxu1 %v2426_v8  ;;  %v2435_v36 = vld [vmem:[#allocation8 + $0xb8] sm:$0xff]   ;;  %v2438_v39 = vld [vmem:[#allocation8 + $0x30] sm:$0xff]   ;;  %v2442_v43 = vld [vmem:[#allocation8 + $0x28] sm:$0xff]  }
  0x46   :  { %2329 = vmatpush3.bf16.msra.mxu0 %v2416_v2  ;;  %v2439_v40 = vld [vmem:[#allocation8 + $0xb0] sm:$0xff]   ;;  %v2443_v44 = vld [vmem:[#allocation8 + $0xa8] sm:$0xff]   ;;  %v2444_v45 = vld [vmem:[#allocation8 + $0x60] sm:$0xff]  }
  0x47   :  { %2330 = vmatprep.subr.bf16.mxu0 %v2417_v3  ;;  %v2445_v46 = vld [vmem:[#allocation8 + $0xe0] sm:$0xff]   ;;  %v2448_v49 = vld [vmem:[#allocation8 + $0x58] sm:$0xff]   ;;  %v2452_v53 = vld [vmem:[#allocation8 + $0x50] sm:$0xff]  }
  0x48   :  { %2349 = vmatpush3.bf16.msra.mxu1 %v2426_v8  ;;  %v2446_v47 = vld [vmem:[#allocation8 + $0x20] sm:$0xff]   ;;  %v2449_v50 = vld [vmem:[#allocation8 + $0xd8] sm:$0xff]   ;;  %v2453_v54 = vld [vmem:[#allocation8 + $0xd0] sm:$0xff]  }
  0x49   :  { %2350 = vmatprep.subr.bf16.mxu1 %v2427_v10  ;;  %v2447_v48 = vld [vmem:[#allocation8 + $0xa0] sm:$0xff]   ;;  %v2450_v51 = vld [vmem:[#allocation8 + $0x18] sm:$0xff]   ;;  %v2454_v55 = vld [vmem:[#allocation8 + $0x10] sm:$0xff]  }
  0x4a   :  { %2331 = vmatpush3.bf16.msra.mxu0 %v2417_v3  ;;  %v2451_v52 = vld [vmem:[#allocation8 + $0x98] sm:$0xff]   ;;  %v2455_v56 = vld [vmem:[#allocation8 + $0x90] sm:$0xff]   ;;  %v2456_v57 = vld [vmem:[#allocation8 + $0x48] sm:$0xff]  }
  0x4b   :  { %2332 = vmatprep.subr.bf16.mxu0 %v2418_v7  ;;  %v2457_v58 = vld [vmem:[#allocation8 + $0xc8] sm:$0xff]   ;;  %v2460_v61 = vld [vmem:[#allocation8 + $0x40] sm:$0xff]   ;;  %v2464_v1 = vld [vmem:[#allocation8 + $0x178] sm:$0xff]  }
  0x4c   :  { %2351 = vmatpush3.bf16.msra.mxu1 %v2427_v10  ;;  %v2458_v59 = vld [vmem:[#allocation8 + $0x8] sm:$0xff]   ;;  %v2461_v62 = vld [vmem:[#allocation8 + $0xc0] sm:$0xff]   ;;  %v2805_v2 = vld [vmem:[#allocation8 + $0x1b8] sm:$0xff]  }
  0x4d   :  { %2352 = vmatprep.subr.bf16.mxu1 %v2428_v12  ;;  %v2459_v60 = vld [vmem:[#allocation8 + $0x88] sm:$0xff]   ;;  %v2462_v63 = vld [vmem:[#allocation8] sm:$0xff]   ;;  %v1993_v3 = vld [vmem:[%s2991_s4] ss:$0 sm:$0xff] }
  0x4e   :  { %2333 = vmatpush3.bf16.msra.mxu0 %v2418_v7  ;;  %v2463_v0 = vld [vmem:[#allocation8 + $0x80] sm:$0xff]   ;;  %vm2827_vm2 = vmand %vm412_vm0, %vm413_vm1 }
  0x4f   :  { %2334 = vmatprep.subr.bf16.mxu0 %v2419_v9 }
  0x50   :  { %2353 = vmatpush3.bf16.msra.mxu1 %v2428_v12 }
  0x51   :  { %2354 = vmatprep.subr.bf16.mxu1 %v2429_v15 }
  0x52   :  { %2335 = vmatpush3.bf16.msra.mxu0 %v2419_v9 }
  0x53   :  { %2336 = vmatprep.subr.bf16.mxu0 %v2420_v11 }
  0x54   :  { %2355 = vmatpush3.bf16.msra.mxu1 %v2429_v15 }
  0x55   :  { %2356 = vmatprep.subr.bf16.mxu1 %v2430_v16 }
  0x56   :  { %2337 = vmatpush3.bf16.msra.mxu0 %v2420_v11 }
  0x57   :  { %2338 = vmatprep.subr.bf16.mxu0 %v2421_v13 }
  0x58   :  { %2357 = vmatpush3.bf16.msra.mxu1 %v2430_v16 }
  0x59   :  { %2358 = vmatprep.subr.bf16.mxu1 %v2431_v17 }
  0x5a   :  { %2339 = vmatpush3.bf16.msra.mxu0 %v2421_v13 }
  0x5b   :  { %2136 = vmatprep.subr.bf16.mxu0 %v2432_v33 }
  0x5c   :  { %2359 = vmatpush3.bf16.msra.mxu1 %v2431_v17 }
  0x5d   :  { %2341 = vmatmul.mubr.bf16.vlgmr.msra.gmra.mxu0 %v2799_v14  ;;  %2164 = vmatprep.subr.bf16.mxu1 %v2433_v34  ;;  %v364_v34 = vunpack.c.l.bf16 %v2796_v4 }
  0x5e   :  { %2137 = vmatpush3.bf16.msra.mxu0 %v2434_v35  ;;  %v365_v35 = vunpack.c.h.bf16 %v2796_v4 }
  0x5f   :  { %2138 = vmatprep.subr.bf16.mxu0 %v2436_v37 }
  0x62   :  { %2139 = vmatpush3.bf16.msra.mxu0 %v2438_v39 }
  0x63   :  { %2140 = vmatprep.subr.bf16.mxu0 %v2440_v41 }
  0x66   :  { %2141 = vmatpush3.bf16.msra.mxu0 %v2442_v43 }
  0x67   :  { %2142 = vmatprep.subr.bf16.mxu0 %v2444_v45 }
  0x6a   :  { %2143 = vmatpush3.bf16.msra.mxu0 %v2446_v47 }
  0x6b   :  { %2144 = vmatprep.subr.bf16.mxu0 %v2448_v49 }
  0x6e   :  { %2145 = vmatpush3.bf16.msra.mxu0 %v2450_v51 }
  0x6f   :  { %2146 = vmatprep.subr.bf16.mxu0 %v2452_v53 }
  0x72   :  { %2147 = vmatpush3.bf16.msra.mxu0 %v2454_v55 }
  0x73   :  { %2148 = vmatprep.subr.bf16.mxu0 %v2456_v57 }
  0x76   :  { %2149 = vmatpush3.bf16.msra.mxu0 %v2458_v59 }
  0x77   :  { %2150 = vmatprep.subr.bf16.mxu0 %v2460_v61 }
  0x7a   :  { %2151 = vmatpush3.bf16.msra.mxu0 %v2462_v63 }
  0x7b   :  { %2192 = vmatprep.subr.bf16.mxu0 %v2464_v1 }
 0x11d   :  { %v2342_v18 = vpop.f32.mrf.mxu0 }
 0x11e   :  { %v232_v24 = vadd.f32 %v2342_v18, %v1982_v20 }
 0x11f   :  { %v223_v19 = vpop.f32.mrf.mxu0 }
 0x120   :  { %v224_v22 = vadd.f32 %v1982_v20, %v223_v19  ;;  %v240_v30 = vmax.f32 %v232_v24, 0.0 }
 0x121   :  { %v2343_v21 = vpop.f32.mrf.mxu0 }
 0x122   :  { %v235_v23 = vadd.f32 %v2343_v21, %v1982_v20  ;;  %v238_v28 = vmax.f32 %v224_v22, 0.0 }
 0x123   :  { %v226_v25 = vpop.f32.mrf.mxu0 }
 0x124   :  { %v227_v26 = vadd.f32 %v1982_v20, %v226_v25  ;;  %v241_v27 = vmax.f32 %v235_v23, 0.0 }
 0x126   :  { %v239_v29 = vmax.f32 %v227_v26, 0.0  ;;  %v243_v32 = vpack.c.bf16 %v241_v27, %v240_v30  ;;  %v366_v30 = vunpack.c.l.bf16 %v2799_v14 }
 0x128   :  { %v242_v31 = vpack.c.bf16 %v239_v29, %v238_v28 }
 0x12a   :  { %2360 = vmatprep.mubr.bf16.mxu1 %v242_v31  ;;  %v367_v31 = vunpack.c.h.bf16 %v2799_v14 }
 0x12b   :  { %2361 = vmatmul.mubr.bf16.vlgmr.msra.gmra.mxu1 %v243_v32 }
 0x12c   :  { %2165 = vmatpush3.bf16.msra.mxu1 %v2435_v36 }
 0x12d   :  { %2166 = vmatprep.subr.bf16.mxu1 %v2437_v38 }
 0x130   :  { %2167 = vmatpush3.bf16.msra.mxu1 %v2439_v40 }
 0x131   :  { %2168 = vmatprep.subr.bf16.mxu1 %v2441_v42 }
 0x134   :  { %2169 = vmatpush3.bf16.msra.mxu1 %v2443_v44 }
 0x135   :  { %2170 = vmatprep.subr.bf16.mxu1 %v2445_v46 }
 0x138   :  { %2171 = vmatpush3.bf16.msra.mxu1 %v2447_v48 }
 0x139   :  { %2172 = vmatprep.subr.bf16.mxu1 %v2449_v50 }
 0x13c   :  { %2173 = vmatpush3.bf16.msra.mxu1 %v2451_v52 }
 0x13d   :  { %2174 = vmatprep.subr.bf16.mxu1 %v2453_v54 }
 0x140   :  { %2175 = vmatpush3.bf16.msra.mxu1 %v2455_v56 }
 0x141   :  { %2176 = vmatprep.subr.bf16.mxu1 %v2457_v58 }
 0x144   :  { %2177 = vmatpush3.bf16.msra.mxu1 %v2459_v60 }
 0x145   :  { %2178 = vmatprep.subr.bf16.mxu1 %v2461_v62 }
 0x148   :  { %2179 = vmatpush3.bf16.msra.mxu1 %v2463_v0 }
 0x149   :  { %2364 = vmatprep.subr.bf16.mxu1 %v2805_v2 }
 0x1eb   :  { %v2362_v5 = vpop.f32.mrf.mxu1 }
 0x1ec   :  { %v358_v6 = vadd.f32 %v2362_v5, %v1993_v3 }
 0x1ed   :  { %v349_v7 = vpop.f32.mrf.mxu1 }
 0x1ee   :  { %v370_v8 = vsub.f32 0.0, %v358_v6  ;;  %v350_v9 = vadd.f32 %v1993_v3, %v349_v7 }
 0x1ef   :  { %v2363_v10 = vpop.f32.mrf.mxu1 }
 0x1f0   :  { %v376_v11 = vmul.f32 1.442695, %v370_v8  ;;  %v368_v12 = vsub.f32 0.0, %v350_v9  ;;  %v361_v13 = vadd.f32 %v2363_v10, %v1993_v3 }
 0x1f1   :  { %v352_v15 = vpop.f32.mrf.mxu1 }
 0x1f2   :  { %2546 = vpow2.f32 %v376_v11  ;;  %v372_v16 = vmul.f32 1.442695, %v368_v12  ;;  %v371_v17 = vsub.f32 0.0, %v361_v13  ;;  %v353_v18 = vadd.f32 %v1993_v3, %v352_v15 }
 0x1f4   :  { %2548 = vpow2.f32 %v372_v16  ;;  %v378_v19 = vmul.f32 1.442695, %v371_v17  ;;  %v369_v20 = vsub.f32 0.0, %v353_v18 }
 0x1f6   :  { %2550 = vpow2.f32 %v378_v19  ;;  %v374_v21 = vmul.f32 1.442695, %v369_v20  ;;  %v2466_v19 = vld [vmem:[#allocation8 + $0x138] sm:$0xff]  }
 0x1f8   :  { %2552 = vpow2.f32 %v374_v21 }
 0x1ff   :  { %v2547_v22 = vpop.eup %2546 }
 0x200   :  { %v382_v23 = vadd.f32 1.0, %v2547_v22 }
 0x201   :  { %v2549_v24 = vpop.eup %2548 }
 0x202   :  { %v380_v25 = vadd.f32 1.0, %v2549_v24  ;;  %2554 = vrcp.f32 %v382_v23 }
 0x203   :  { %v2551_v26 = vpop.eup %2550 }
 0x204   :  { %v383_v27 = vadd.f32 1.0, %v2551_v26  ;;  %2556 = vrcp.f32 %v380_v25 }
 0x205   :  { %v2553_v28 = vpop.eup %2552 }
 0x206   :  { %2558 = vrcp.f32 %v383_v27  ;;  %v381_v29 = vadd.f32 1.0, %v2553_v28  ;;  %v2467_v27 = vld [vmem:[#allocation8 + $0x170] sm:$0xff]  }
 0x208   :  { %2560 = vrcp.f32 %v381_v29 }
 0x20f   :  { %v2555_v32 = vpop.eup %2554 }
 0x210   :  { %v2815_v37 = vmul.f32 %v2555_v32, %v366_v30  ;;  %v2468_v30 = vld [vmem:[#allocation8 + $0x1b0] sm:$0xff]  }
 0x211   :  { %v2557_v33 = vpop.eup %2556 }
 0x212   :  { %v2819_v40 = vmul.f32 %v2557_v33, %v364_v34 }
 0x213   :  { %v2559_v36 = vpop.eup %2558 }
 0x214   :  { %v2817_v38 = vmul.f32 %v2559_v36, %v367_v31  ;;  %v2469_v31 = vld [vmem:[#allocation8 + $0x130] sm:$0xff]  }
 0x215   :  { %v2561_v39 = vpop.eup %2560 }
 0x216   :  { %v393_v41 = vpack.c.bf16 %v2817_v38, %v2815_v37  ;;  %v2823_v42 = vmul.f32 %v2561_v39, %v365_v35  ;;  %v2470_v39 = vld [vmem:[#allocation8 + $0x168] sm:$0xff]  }
 0x218   :  { %v392_v14 = vpack.c.bf16 %v2823_v42, %v2819_v40  ;;  %v403_v43 = vshrl.u32 %v393_v41, 16  ;;  %v406_v4 = vshll.u32 %v393_v41, 16  ;;  %v2471_v41 = vld [vmem:[#allocation8 + $0x1a8] sm:$0xff]  }
 0x21a   :  { %v395_v44 = vshrl.u32 %v392_v14, 16  ;;  %v398_v45 = vshll.u32 %v392_v14, 16  ;;  %v405_v46 = vrot.slane %v403_v43, 6  ;;  %v408_v47 = vrot.slane %v406_v4, 7  ;;  %v2472_v4 = vld [vmem:[#allocation8 + $0x128] sm:$0xff]  }
 0x21c   :  { %v397_v49 = vrot.slane %v395_v44, 6  ;;  %v400_v50 = vrot.slane %v398_v45, 7  ;;  %v409_v51 = vor.u32 %v408_v47, %v405_v46  ;;  %v2473_v47 = vld [vmem:[#allocation8 + $0x160] sm:$0xff]  }
 0x21e   :  { %v401_v52 = vor.u32 %v400_v50, %v397_v49  ;;  %v2833_v53 = vsel %vm2827_vm2, 0, %v409_v51  ;;  %v2837_v54 = vsel %vm2827_vm2, %v409_v51, 0  ;;  %v2474_v50 = vld [vmem:[#allocation8 + $0x1a0] sm:$0xff]  }
 0x21f   :  { %v2840_v55 = vshll.u32 %v2833_v53, 16  ;;  %v2851_v58 = vshrl.u32 %v2833_v53, 16  ;;  %v2860_v1 = vshll.u32 %v2837_v54, 16  ;;  %v472_v3 = vshrl.u32 %v2837_v54, 16 }
 0x220   :  { %v2844_v56 = vsel %vm2827_vm2, 0, %v401_v52  ;;  %v2848_v57 = vsel %vm2827_vm2, %v401_v52, 0  ;;  %v454_v14 = vrot.slane %v2833_v53, 1  ;;  %v455_v43 = vrot.slane %v2837_v54, 1  ;;  %v2475_v52 = vld [vmem:[#allocation8 + $0x120] sm:$0xff]  }
 0x221   :  { %v421_v59 = vshrl.u32 %v2844_v56, 16  ;;  %v423_v60 = vshll.u32 %v2844_v56, 16  ;;  %v428_v61 = vshll.u32 %v2848_v57, 16  ;;  %v463_v62 = vshrl.u32 %v2848_v57, 16 }
 0x222   :  { %v451_v63 = vrot.slane %v2844_v56, 1  ;;  %v437_v0 = vrot.slane %v2840_v55, 1  ;;  %v452_v8 = vrot.slane %v2848_v57, 1  ;;  %v469_v16 = vrot.slane %v2851_v58, 1 }
 0x223   :  { %v425_v5 = vrot.slane %v423_v60, 1  ;;  %v460_v6 = vrot.slane %v421_v59, 1  ;;  %v461_v7 = vrot.slane %v423_v60, 2  ;;  %v430_v9 = vrot.slane %v428_v61, 1 }
 0x224   :  { %v465_v10 = vrot.slane %v463_v62, 1  ;;  %v466_v11 = vrot.slane %v428_v61, 2  ;;  %v438_v12 = vor.u32 %v437_v0, %v2851_v58  ;;  %v470_v17 = vrot.slane %v2840_v55, 2  ;;  %v2480_v0 = vld [vmem:[#allocation8 + $0x190] sm:$0xff]  }
 0x225   :  { %v426_v13 = vor.u32 %v425_v5, %v421_v59  ;;  %v462_v15 = vor.u32 %v461_v7, %v460_v6  ;;  %v474_v20 = vrot.slane %v472_v3, 1  ;;  %v475_v21 = vrot.slane %v2860_v1, 2  ;;  %v2481_v5 = vld [vmem:[#allocation8 + $0x110] sm:$0xff]   ;;  %v2482_v6 = vld [vmem:[#allocation8 + $0x148] sm:$0xff]  }
 0x226   :  { %v467_v18 = vor.u32 %v466_v11, %v465_v10  ;;  %v442_v23 = vrot.slane %v2860_v1, 1  ;;  %v471_v24 = vor.u32 %v470_v17, %v469_v16  ;;  %v453_v28 = vsel %vm450_vm5, %v451_v63, %v452_v8  ;;  %v2479_v63 = vld [vmem:[#allocation8 + $0x150] sm:$0xff]   ;;  %v2483_v7 = vld [vmem:[#allocation8 + $0x188] sm:$0xff]   ;;  %v2486_v10 = vld [vmem:[#allocation8 + $0x180] sm:$0xff]  }
 0x227   :  { %v431_v22 = vsel %vm419_vm3, %v426_v13, %v430_v9  ;;  %v476_v26 = vor.u32 %v475_v21, %v474_v20  ;;  %v490_v32 = vrot.slane %v421_v59, 2  ;;  %v491_v33 = vrot.slane %v423_v60, 3  ;;  %v2476_v60 = vld [vmem:[#allocation8 + $0x158] sm:$0xff]   ;;  %v2484_v8 = vld [vmem:[#allocation8 + $0x108] sm:$0xff]   ;;  %v2485_v9 = vld [vmem:[#allocation8 + $0x140] sm:$0xff]  }
 0x228   :  { %1002 = vmatprep.mubr.bf16.mxu0 %v431_v22  ;;  %v468_v25 = vsel %vm459_vm4, %v462_v15, %v467_v18  ;;  %v443_v29 = vsel %vm419_vm3, %v438_v12, %v442_v23  ;;  %v493_v34 = vrot.slane %v463_v62, 2  ;;  %v494_v35 = vrot.slane %v428_v61, 3  ;;  %v2477_v61 = vld [vmem:[#allocation8 + $0x198] sm:$0xff]   ;;  %v2487_v16 = vld [vmem:[#allocation8 + $0x100] sm:$0xff]  }
 0x229   :  { %1051 = vmatprep.mubr.bf16.mxu1 %v468_v25  ;;  %1003 = vmatmul.mubr.bf16.vlgmr.msra.gmra.mxu0 %v2844_v56  ;;  %v477_v36 = vsel %vm459_vm4, %v471_v24, %v476_v26  ;;  %v492_v44 = vor.u32 %v491_v33, %v490_v32  ;;  %v508_v46 = vrot.slane %v2848_v57, 3  ;;  %v456_v49 = vsel %vm450_vm5, %v454_v14, %v455_v43  ;;  %v2478_v62 = vld [vmem:[#allocation8 + $0x118] sm:$0xff]   ;;  %v2499_v32 = vld [vmem:[#allocation10 + $0xa8] sm:$0xff]   ;;  %v2500_v33 = vld [vmem:[#allocation10 + $0x60] sm:$0xff]  }
 0x22a   :  { %1052 = vmatmul.mubr.bf16.vlgmr.msra.gmra.mxu1 %v453_v28  ;;  %2193 = vmatpush3.bf16.msra.mxu0 %v2466_v19  ;;  %v495_v45 = vor.u32 %v494_v35, %v493_v34  ;;  %v497_v11 = vrot.slane %v2851_v58, 2  ;;  %v498_v12 = vrot.slane %v2840_v55, 3  ;;  %v500_v13 = vrot.slane %v472_v3, 2  ;;  %v2488_v23 = vld [vmem:[#allocation10 + $0x78] sm:$0xff]   ;;  %v2493_v28 = vld [vmem:[#allocation10 + $0xf0] sm:$0xff]   ;;  %v2501_v34 = vld [vmem:[#allocation10 + $0xe0] sm:$0xff]  }
 0x22b   :  { %2365 = vmatpush3.bf16.msra.mxu1 %v2805_v2  ;;  %1010 = vmatprep.mubr.bf16.mxu0 %v443_v29  ;;  %v507_v2 = vrot.slane %v2844_v56, 3  ;;  %v501_v15 = vrot.slane %v2860_v1, 3  ;;  %v481_v17 = vrot.slane %v2844_v56, 2  ;;  %v482_v18 = vrot.slane %v2848_v57, 2  ;;  %v2489_v24 = vld [vmem:[#allocation10 + $0xf8] sm:$0xff]   ;;  %v2494_v29 = vld [vmem:[#allocation10 + $0x30] sm:$0xff]  }
 0x22c   :  { %1059 = vmatprep.mubr.bf16.mxu1 %v477_v36  ;;  %2194 = vmatprep.subr.bf16.mxu0 %v2467_v27  ;;  %v496_v51 = vsel %vm489_vm6, %v492_v44, %v495_v45  ;;  %v510_v19 = vrot.slane %v2833_v53, 3  ;;  %v511_v58 = vrot.slane %v2837_v54, 3  ;;  %v499_v20 = vor.u32 %v498_v12, %v497_v11  ;;  %v2490_v25 = vld [vmem:[#allocation10 + $0x38] sm:$0xff]   ;;  %v2492_v27 = vld [vmem:[#allocation10 + $0x70] sm:$0xff]   ;;  %v2502_v35 = vld [vmem:[#allocation10 + $0x20] sm:$0xff]  }
 0x22d   :  { %2366 = vmatprep.subr.bf16.mxu1 %v2468_v30  ;;  %v509_v59 = vsel %vm506_vm7, %v507_v2, %v508_v46  ;;  %v502_v55 = vor.u32 %v501_v15, %v500_v13  ;;  %v483_v1 = vsel %vm480_vm8, %v481_v17, %v482_v18  ;;  %v484_v56 = vrot.slane %v2833_v53, 2  ;;  %v2491_v26 = vld [vmem:[#allocation10 + $0xb8] sm:$0xff]   ;;  %v2503_v36 = vld [vmem:[#allocation10 + $0xa0] sm:$0xff]   ;;  %v2509_v44 = vld [vmem:[#allocation10 + $0xd0] sm:$0xff]  }
 0x22e   :  { %2195 = vmatpush3.bf16.msra.mxu0 %v2469_v31  ;;  %v512_v3 = vsel %vm506_vm7, %v510_v19, %v511_v58  ;;  %v485_v57 = vrot.slane %v2837_v54, 2  ;;  %v2497_v54 = vld [vmem:[#allocation10 + $0xe8] sm:$0xff]   ;;  %v2506_v14 = vld [vmem:[#allocation10 + $0x18] sm:$0xff]   ;;  %v2510_v45 = vld [vmem:[#allocation10 + $0x10] sm:$0xff]  }
 0x22f   :  { %2367 = vmatpush3.bf16.msra.mxu1 %v2468_v30  ;;  %2196 = vmatprep.subr.bf16.mxu0 %v2470_v39  ;;  %v503_v21 = vsel %vm489_vm6, %v499_v20, %v502_v55  ;;  %v2495_v30 = vld [vmem:[#allocation10 + $0xb0] sm:$0xff]   ;;  %v2498_v31 = vld [vmem:[#allocation10 + $0x28] sm:$0xff]   ;;  %v2504_v39 = vld [vmem:[#allocation10 + $0x58] sm:$0xff]  }
 0x230   :  { %2368 = vmatprep.subr.bf16.mxu1 %v2471_v41  ;;  %v486_v22 = vsel %vm480_vm8, %v484_v56, %v485_v57  ;;  %v2507_v43 = vld [vmem:[#allocation10 + $0x98] sm:$0xff]   ;;  %v2511_v2 = vld [vmem:[#allocation10 + $0x90] sm:$0xff]   ;;  %v2512_v46 = vld [vmem:[#allocation10 + $0x48] sm:$0xff]  }
 0x231   :  { %1011 = vmatmul.mubr.bf16.gmra.mxu0 %v2833_v53  ;;  %v2496_v53 = vld [vmem:[#allocation10 + $0x68] sm:$0xff]   ;;  %v2002_v19 = vld [vmem:[%s2993_s6] ss:$0 sm:$0xff] }
 0x232   :  { %1060 = vmatmul.mubr.bf16.gmra.mxu1 %v456_v49  ;;  %2197 = vmatpush3.bf16.msra.mxu0 %v2472_v4  ;;  %v2508_v4 = vld [vmem:[#allocation10 + $0x50] sm:$0xff]   ;;  %v2514_v49 = vld [vmem:[#allocation10 + $0x8] sm:$0xff]  }
 0x233   :  { %2369 = vmatpush3.bf16.msra.mxu1 %v2471_v41  ;;  %1100 = vmatprep.mubr.bf16.mxu0 %v496_v51  ;;  %v2505_v41 = vld [vmem:[#allocation10 + $0xd8] sm:$0xff]   ;;  %v2516_v51 = vld [vmem:[#allocation10 + $0x40] sm:$0xff]  }
 0x234   :  { %2380 = vmatprep.mubr.bf16.mxu1 %v509_v59  ;;  %2198 = vmatprep.subr.bf16.mxu0 %v2473_v47  ;;  %v2513_v47 = vld [vmem:[#allocation10 + $0xc8] sm:$0xff]   ;;  %v2518_v59 = vld [vmem:[#allocation10] sm:$0xff]  }
 0x235   :  { %2370 = vmatprep.subr.bf16.mxu1 %v2474_v50 }
 0x236   :  { %2199 = vmatpush3.bf16.msra.mxu0 %v2475_v52  ;;  %v2517_v52 = vld [vmem:[#allocation10 + $0xc0] sm:$0xff]  }
 0x237   :  { %2371 = vmatpush3.bf16.msra.mxu1 %v2474_v50  ;;  %2200 = vmatprep.subr.bf16.mxu0 %v2476_v60  ;;  %v2515_v50 = vld [vmem:[#allocation10 + $0x88] sm:$0xff]   ;;  %v2519_v60 = vld [vmem:[#allocation10 + $0x80] sm:$0xff]  }
 0x238   :  { %2372 = vmatprep.subr.bf16.mxu1 %v2477_v61 }
 0x23a   :  { %2201 = vmatpush3.bf16.msra.mxu0 %v2478_v62  ;;  %v2901_v62 = vld [vmem:[#allocation10 + $0x1b8] sm:$0xff]  }
 0x23b   :  { %2373 = vmatpush3.bf16.msra.mxu1 %v2477_v61  ;;  %2202 = vmatprep.subr.bf16.mxu0 %v2479_v63  ;;  %v2520_v61 = vld [vmem:[#allocation10 + $0x178] sm:$0xff]  }
 0x23c   :  { %2374 = vmatprep.subr.bf16.mxu1 %v2480_v0 }
 0x23e   :  { %2203 = vmatpush3.bf16.msra.mxu0 %v2481_v5 }
 0x23f   :  { %2375 = vmatpush3.bf16.msra.mxu1 %v2480_v0  ;;  %2204 = vmatprep.subr.bf16.mxu0 %v2482_v6 }
 0x240   :  { %2376 = vmatprep.subr.bf16.mxu1 %v2483_v7 }
 0x242   :  { %2205 = vmatpush3.bf16.msra.mxu0 %v2484_v8 }
 0x243   :  { %2377 = vmatpush3.bf16.msra.mxu1 %v2483_v7  ;;  %2206 = vmatprep.subr.bf16.mxu0 %v2485_v9 }
 0x244   :  { %2378 = vmatprep.subr.bf16.mxu1 %v2486_v10 }
 0x246   :  { %2207 = vmatpush3.bf16.msra.mxu0 %v2487_v16 }
 0x247   :  { %2379 = vmatpush3.bf16.msra.mxu1 %v2486_v10  ;;  %2230 = vmatprep.subr.bf16.mxu0 %v2488_v23 }
 0x248   :  { %2258 = vmatprep.subr.bf16.mxu1 %v2489_v24 }
 0x249   :  { %1101 = vmatmul.mubr.bf16.vlgmr.msra.gmra.mxu0 %v483_v1 }
 0x24a   :  { %2381 = vmatmul.mubr.bf16.vlgmr.msra.gmra.mxu1 %v512_v3  ;;  %1108 = vmatprep.mubr.bf16.mxu0 %v503_v21 }
 0x24b   :  { %2231 = vmatpush3.bf16.msra.mxu0 %v2490_v25  ;;  %2259 = vmatpush3.bf16.msra.mxu1 %v2491_v26 }
 0x24c   :  { %2232 = vmatprep.subr.bf16.mxu0 %v2492_v27  ;;  %2260 = vmatprep.subr.bf16.mxu1 %v2493_v28 }
 0x24f   :  { %2233 = vmatpush3.bf16.msra.mxu0 %v2494_v29  ;;  %2261 = vmatpush3.bf16.msra.mxu1 %v2495_v30 }
 0x250   :  { %2234 = vmatprep.subr.bf16.mxu0 %v2496_v53  ;;  %2262 = vmatprep.subr.bf16.mxu1 %v2497_v54 }
 0x251   :  { %1109 = vmatmul.mubr.bf16.gmra.mxu0 %v486_v22 }
 0x253   :  { %2235 = vmatpush3.bf16.msra.mxu0 %v2498_v31  ;;  %2263 = vmatpush3.bf16.msra.mxu1 %v2499_v32 }
 0x254   :  { %2236 = vmatprep.subr.bf16.mxu0 %v2500_v33  ;;  %2264 = vmatprep.subr.bf16.mxu1 %v2501_v34 }
 0x257   :  { %2237 = vmatpush3.bf16.msra.mxu0 %v2502_v35  ;;  %2265 = vmatpush3.bf16.msra.mxu1 %v2503_v36 }
 0x258   :  { %2238 = vmatprep.subr.bf16.mxu0 %v2504_v39  ;;  %2266 = vmatprep.subr.bf16.mxu1 %v2505_v41 }
 0x25b   :  { %2239 = vmatpush3.bf16.msra.mxu0 %v2506_v14  ;;  %2267 = vmatpush3.bf16.msra.mxu1 %v2507_v43 }
 0x25c   :  { %2240 = vmatprep.subr.bf16.mxu0 %v2508_v4  ;;  %2268 = vmatprep.subr.bf16.mxu1 %v2509_v44 }
 0x25f   :  { %2241 = vmatpush3.bf16.msra.mxu0 %v2510_v45  ;;  %2269 = vmatpush3.bf16.msra.mxu1 %v2511_v2 }
 0x260   :  { %2242 = vmatprep.subr.bf16.mxu0 %v2512_v46  ;;  %2270 = vmatprep.subr.bf16.mxu1 %v2513_v47 }
 0x263   :  { %2243 = vmatpush3.bf16.msra.mxu0 %v2514_v49  ;;  %2271 = vmatpush3.bf16.msra.mxu1 %v2515_v50 }
 0x264   :  { %2244 = vmatprep.subr.bf16.mxu0 %v2516_v51  ;;  %2272 = vmatprep.subr.bf16.mxu1 %v2517_v52 }
 0x267   :  { %2245 = vmatpush3.bf16.msra.mxu0 %v2518_v59  ;;  %2273 = vmatpush3.bf16.msra.mxu1 %v2519_v60 }
 0x268   :  { %2286 = vmatprep.subr.bf16.mxu0 %v2520_v61  ;;  %2384 = vmatprep.subr.bf16.mxu1 %v2901_v62 }
 0x2e9   :  { %v2152_v63 = vpop.f32.mrf.mxu0 }
 0x2ea   :  { %v2180_v0 = vpop.f32.mrf.mxu1 }
 0x2eb   :  { %v2153_v5 = vpop.f32.mrf.mxu0 }
 0x2ec   :  { %v2181_v6 = vpop.f32.mrf.mxu1  ;;  %v2154_v17 = vadd.f32 %v2153_v5, %v2152_v63 }
 0x2ed   :  { %v2155_v7 = vpop.f32.mrf.mxu0  ;;  %v2182_v21 = vadd.f32 %v2181_v6, %v2180_v0 }
 0x2ee   :  { %v2183_v8 = vpop.f32.mrf.mxu1  ;;  %v1005_v20 = vadd.f32 %v2154_v17, %v2002_v19 }
 0x2ef   :  { %v2156_v9 = vpop.f32.mrf.mxu0 }
 0x2f0   :  { %v2184_v10 = vpop.f32.mrf.mxu1  ;;  %v2157_v55 = vadd.f32 %v2156_v9, %v2155_v7  ;;  %v1054_v22 = vadd.f32 %v2182_v21, %v1005_v20 }
 0x2f1   :  { %v2158_v11 = vpop.f32.mrf.mxu0  ;;  %v2185_v28 = vadd.f32 %v2184_v10, %v2183_v8 }
 0x2f2   :  { %v2186_v12 = vpop.f32.mrf.mxu1  ;;  %v1008_v23 = vadd.f32 %v2157_v55, %v2002_v19 }
 0x2f3   :  { %v2159_v13 = vpop.f32.mrf.mxu0 }
 0x2f4   :  { %v2187_v15 = vpop.f32.mrf.mxu1  ;;  %v2160_v24 = vadd.f32 %v2159_v13, %v2158_v11  ;;  %v1057_v54 = vadd.f32 %v2185_v28, %v1008_v23 }
 0x2f5   :  { %v2161_v16 = vpop.f32.mrf.mxu0  ;;  %v2188_v35 = vadd.f32 %v2187_v15, %v2186_v12 }
 0x2f6   :  { %v2189_v18 = vpop.f32.mrf.mxu1  ;;  %v1013_v31 = vadd.f32 %v2160_v24, %v2002_v19 }
 0x2f7   :  { %v2162_v58 = vpop.f32.mrf.mxu0 }
 0x2f8   :  { %v2190_v1 = vpop.f32.mrf.mxu1  ;;  %v2163_v32 = vadd.f32 %v2162_v58, %v2161_v16  ;;  %v1062_v43 = vadd.f32 %v2188_v35, %v1013_v31  ;;  %v2524_v35 = vld [vmem:[#allocation10 + $0x1b0] sm:$0xff]  }
 0x2f9   :  { %v2191_v46 = vadd.f32 %v2190_v1, %v2189_v18 }
 0x2fa   :  { %v1016_v4 = vadd.f32 %v2163_v32, %v2002_v19 }
 0x2fc   :  { %v1065_v52 = vadd.f32 %v2191_v46, %v1016_v4 }
 0x309   :  { %v2208_v3 = vpop.f32.mrf.mxu0 }
 0x30a   :  { %v2382_v56 = vpop.f32.mrf.mxu1 }
 0x30b   :  { %v2209_v57 = vpop.f32.mrf.mxu0 }
 0x30c   :  { %v2210_v25 = vadd.f32 %v2209_v57, %v2208_v3  ;;  %v1151_v26 = vpop.f32.mrf.mxu1 }
 0x30d   :  { %v2211_v27 = vpop.f32.mrf.mxu0 }
 0x30e   :  { %v1103_v29 = vadd.f32 %v2210_v25, %v1054_v22  ;;  %v2383_v30 = vpop.f32.mrf.mxu1 }
 0x30f   :  { %v2212_v53 = vpop.f32.mrf.mxu0 }
 0x310   :  { %v2213_v33 = vadd.f32 %v2212_v53, %v2211_v27  ;;  %v1152_v36 = vadd.f32 %v1151_v26, %v1103_v29  ;;  %v1154_v41 = vpop.f32.mrf.mxu1 }
 0x311   :  { %v2214_v34 = vpop.f32.mrf.mxu0 }
 0x312   :  { %v1106_v39 = vadd.f32 %v2213_v33, %v1057_v54  ;;  %v1166_v47 = vmax.f32 %v1152_v36, 0.0  ;;  %v2523_v54 = vld [vmem:[#allocation10 + $0x170] sm:$0xff]  }
 0x313   :  { %v2215_v14 = vpop.f32.mrf.mxu0 }
 0x314   :  { %v1155_v44 = vadd.f32 %v1154_v41, %v1106_v39  ;;  %v2216_v45 = vadd.f32 %v2215_v14, %v2214_v34  ;;  %v2525_v14 = vld [vmem:[#allocation10 + $0x130] sm:$0xff]  }
 0x315   :  { %v2217_v2 = vpop.f32.mrf.mxu0 }
 0x316   :  { %v1167_v49 = vmax.f32 %v1155_v44, 0.0  ;;  %v1111_v50 = vadd.f32 %v2216_v45, %v1062_v43 }
 0x317   :  { %v2218_v51 = vpop.f32.mrf.mxu0 }
 0x318   :  { %v1170_v59 = vpack.c.bf16 %v1167_v49, %v1166_v47  ;;  %v2219_v60 = vadd.f32 %v2218_v51, %v2217_v2  ;;  %v1160_v0 = vadd.f32 %v2382_v56, %v1111_v50  ;;  %v2526_v49 = vld [vmem:[#allocation10 + $0x168] sm:$0xff]  }
 0x31a   :  { %v1173_v61 = vshrl.u32 %v1170_v59, 16  ;;  %v1176_v63 = vshll.u32 %v1170_v59, 16  ;;  %v1114_v5 = vadd.f32 %v2219_v60, %v1065_v52  ;;  %v1168_v10 = vmax.f32 %v1160_v0, 0.0  ;;  %v2527_v52 = vld [vmem:[#allocation10 + $0x1a8] sm:$0xff]  }
 0x31c   :  { %v1175_v6 = vrot.slane %v1173_v61, 6  ;;  %v1178_v7 = vrot.slane %v1176_v63, 7  ;;  %v1163_v8 = vadd.f32 %v2383_v30, %v1114_v5  ;;  %v2522_v30 = vld [vmem:[#allocation10 + $0x138] sm:$0xff]   ;;  %v2528_v5 = vld [vmem:[#allocation10 + $0x128] sm:$0xff]  }
 0x31e   :  { %v1179_v9 = vor.u32 %v1178_v7, %v1175_v6  ;;  %v1169_v11 = vmax.f32 %v1163_v8, 0.0 }
 0x320   :  { %v2909_v12 = vsel %vm2827_vm2, 0, %v1179_v9  ;;  %v2913_v13 = vsel %vm2827_vm2, %v1179_v9, 0  ;;  %v1171_v15 = vpack.c.bf16 %v1169_v11, %v1168_v10 }
 0x321   :  { %v1195_v16 = vshrl.u32 %v2909_v12, 16  ;;  %v1197_v17 = vshll.u32 %v2909_v12, 16  ;;  %v1202_v18 = vshll.u32 %v2913_v13, 16  ;;  %v1235_v19 = vshrl.u32 %v2913_v13, 16 }
 0x322   :  { %v1181_v58 = vshrl.u32 %v1171_v15, 16  ;;  %v1184_v20 = vshll.u32 %v1171_v15, 16  ;;  %v1224_v55 = vrot.slane %v2909_v12, 1  ;;  %v1225_v56 = vrot.slane %v2913_v13, 1  ;;  %v2529_v15 = vld [vmem:[#allocation10 + $0x160] sm:$0xff]  }
 0x323   :  { %v1199_v1 = vrot.slane %v1197_v17, 1  ;;  %v1232_v3 = vrot.slane %v1195_v16, 1  ;;  %v1233_v21 = vrot.slane %v1197_v17, 2  ;;  %v1237_v23 = vrot.slane %v1235_v19, 1 }
 0x324   :  { %v1183_v57 = vrot.slane %v1181_v58, 6  ;;  %v1186_v22 = vrot.slane %v1184_v20, 7  ;;  %v1238_v24 = vrot.slane %v1202_v18, 2  ;;  %v1204_v26 = vrot.slane %v1202_v18, 1  ;;  %v2532_v20 = vld [vmem:[#allocation10 + $0x158] sm:$0xff]  }
 0x325   :  { %v1200_v25 = vor.u32 %v1199_v1, %v1195_v16  ;;  %v1234_v27 = vor.u32 %v1233_v21, %v1232_v3  ;;  %v1226_v34 = vsel %vm450_vm5, %v1224_v55, %v1225_v56  ;;  %v1260_v43 = vrot.slane %v1195_v16, 2  ;;  %v2533_v55 = vld [vmem:[#allocation10 + $0x198] sm:$0xff]   ;;  %v2535_v3 = vld [vmem:[#allocation10 + $0x150] sm:$0xff]  }
 0x326   :  { %v1187_v28 = vor.u32 %v1186_v22, %v1183_v57  ;;  %v1239_v29 = vor.u32 %v1238_v24, %v1237_v23  ;;  %v1261_v4 = vrot.slane %v1197_v17, 3  ;;  %v1263_v44 = vrot.slane %v1235_v19, 2  ;;  %v2530_v17 = vld [vmem:[#allocation10 + $0x1a0] sm:$0xff]   ;;  %v2534_v1 = vld [vmem:[#allocation10 + $0x118] sm:$0xff]   ;;  %v2536_v21 = vld [vmem:[#allocation10 + $0x190] sm:$0xff]  }
 0x327   :  { %v1205_v53 = vsel %vm419_vm3, %v1200_v25, %v1204_v26  ;;  %v1264_v45 = vrot.slane %v1202_v18, 3  ;;  %v1276_v9 = vrot.slane %v2909_v12, 3  ;;  %v1277_v10 = vrot.slane %v2913_v13, 3  ;;  %v2531_v19 = vld [vmem:[#allocation10 + $0x120] sm:$0xff]   ;;  %v2537_v56 = vld [vmem:[#allocation10 + $0x110] sm:$0xff]   ;;  %v2538_v57 = vld [vmem:[#allocation10 + $0x148] sm:$0xff]  }
 0x328   :  { %v2924_v31 = vsel %vm2827_vm2, 0, %v1187_v28  ;;  %v2928_v32 = vsel %vm2827_vm2, %v1187_v28, 0  ;;  %1771 = vmatprep.mubr.bf16.mxu0 %v1205_v53  ;;  %v1240_v33 = vsel %vm459_vm4, %v1234_v27, %v1239_v29  ;;  %v1262_v6 = vor.u32 %v1261_v4, %v1260_v43  ;;  %v2539_v22 = vld [vmem:[#allocation10 + $0x188] sm:$0xff]   ;;  %v2541_v24 = vld [vmem:[#allocation10 + $0x140] sm:$0xff]  }
 0x329   :  { %1820 = vmatprep.mubr.bf16.mxu1 %v1240_v33  ;;  %1772 = vmatmul.mubr.bf16.vlgmr.msra.gmra.mxu0 %v2909_v12  ;;  %v2934_v36 = vshrl.u32 %v2924_v31, 16  ;;  %v2937_v39 = vshll.u32 %v2924_v31, 16  ;;  %v2940_v41 = vshll.u32 %v2928_v32, 16  ;;  %v1244_v48 = vshrl.u32 %v2928_v32, 16  ;;  %v2540_v23 = vld [vmem:[#allocation10 + $0x108] sm:$0xff]   ;;  %v2542_v25 = vld [vmem:[#allocation10 + $0x180] sm:$0xff]  }
 0x32a   :  { %1821 = vmatmul.mubr.bf16.vlgmr.msra.gmra.mxu1 %v1226_v34  ;;  %2287 = vmatpush3.bf16.msra.mxu0 %v2522_v30  ;;  %v1227_v59 = vrot.slane %v2924_v31, 1  ;;  %v1228_v63 = vrot.slane %v2928_v32, 1  ;;  %v1265_v7 = vor.u32 %v1264_v45, %v1263_v44  ;;  %v1278_v58 = vsel %vm506_vm7, %v1276_v9, %v1277_v10  ;;  %v2543_v30 = vld [vmem:[#allocation10 + $0x100] sm:$0xff]  }
 0x32b   :  { %2385 = vmatpush3.bf16.msra.mxu1 %v2901_v62  ;;  %2288 = vmatprep.subr.bf16.mxu0 %v2523_v54  ;;  %v1211_v2 = vrot.slane %v2937_v39, 1  ;;  %v1241_v46 = vrot.slane %v2934_v36, 1  ;;  %v1242_v47 = vrot.slane %v2937_v39, 2  ;;  %v1246_v50 = vrot.slane %v1244_v48, 1 }
 0x32c   :  { %2386 = vmatprep.subr.bf16.mxu1 %v2524_v35  ;;  %v1247_v51 = vrot.slane %v2940_v41, 2  ;;  %v1216_v62 = vrot.slane %v2940_v41, 1  ;;  %v1229_v16 = vsel %vm450_vm5, %v1227_v59, %v1228_v63  ;;  %v1266_v18 = vsel %vm489_vm6, %v1262_v6, %v1265_v7 }
 0x32d   :  { %v1212_v60 = vor.u32 %v1211_v2, %v2934_v36  ;;  %v1243_v61 = vor.u32 %v1242_v47, %v1241_v46  ;;  %v1267_v26 = vrot.slane %v2934_v36, 2  ;;  %v1268_v27 = vrot.slane %v2937_v39, 3 }
 0x32e   :  { %2289 = vmatpush3.bf16.msra.mxu0 %v2525_v14  ;;  %v1248_v0 = vor.u32 %v1247_v51, %v1246_v50  ;;  %v1270_v28 = vrot.slane %v1244_v48, 2  ;;  %v1271_v29 = vrot.slane %v2940_v41, 3  ;;  %v1252_v53 = vrot.slane %v2909_v12, 2 }
 0x32f   :  { %2387 = vmatpush3.bf16.msra.mxu1 %v2524_v35  ;;  %v1217_v8 = vsel %vm419_vm3, %v1212_v60, %v1216_v62  ;;  %2290 = vmatprep.subr.bf16.mxu0 %v2526_v49  ;;  %v1253_v54 = vrot.slane %v2913_v13, 2  ;;  %v1279_v33 = vrot.slane %v2924_v31, 3  ;;  %v1280_v34 = vrot.slane %v2928_v32, 3 }
 0x330   :  { %1779 = vmatprep.mubr.bf16.mxu0 %v1217_v8  ;;  %v1249_v11 = vsel %vm459_vm4, %v1243_v61, %v1248_v0  ;;  %2388 = vmatprep.subr.bf16.mxu1 %v2527_v52  ;;  %v1269_v35 = vor.u32 %v1268_v27, %v1267_v26  ;;  %v1272_v36 = vor.u32 %v1271_v29, %v1270_v28  ;;  %v1255_v12 = vrot.slane %v2924_v31, 2 }
 0x331   :  { %1828 = vmatprep.mubr.bf16.mxu1 %v1249_v11  ;;  %1780 = vmatmul.mubr.bf16.gmra.mxu0 %v2924_v31  ;;  %v1254_v39 = vsel %vm480_vm8, %v1252_v53, %v1253_v54  ;;  %v1281_v41 = vsel %vm506_vm7, %v1279_v33, %v1280_v34  ;;  %v1256_v13 = vrot.slane %v2928_v32, 2  ;;  %v2059_v32 = vld [vmem:[%s2995_s8] ss:$0 sm:$0xff]  ;;  %s2713_s8 = smov [#allocation11]  }
 0x332   :  { %1829 = vmatmul.mubr.bf16.gmra.mxu1 %v1229_v16  ;;  %2291 = vmatpush3.bf16.msra.mxu0 %v2528_v5  ;;  %v1273_v48 = vsel %vm489_vm6, %v1269_v35, %v1272_v36  ;;  %s1968_s15 = sshll.u32 %s2713_s8, 4  ;;  %s1969_s15 = int_to_ptr.vmem [resolvable:$true] %s1968_s15 }
 0x333   :  { %2389 = vmatpush3.bf16.msra.mxu1 %v2527_v52  ;;  %1869 = vmatprep.mubr.bf16.mxu0 %v1266_v18  ;;  %v1257_v14 = vsel %vm480_vm8, %v1255_v12, %v1256_v13  ;;  %s2678_s16 = scalar_lea.vmem %s1969_s15, 512  ;;  %p2683_p12 = scmp.lt.s32.totalorder %s1969_s15, %s1969_s15 }
 0x334   :  { %2400 = vmatprep.mubr.bf16.mxu1 %v1278_v58  ;;  %2292 = vmatprep.subr.bf16.mxu0 %v2529_v15  ;;  %p2679_p11 = scmp.ne.s32.totalorder %s1969_s15, %s2678_s16  ;;  %p2684_p13 = scmp.lt.s32.totalorder %s2678_s16, %s2678_s16 }
 0x335   :  { %2390 = vmatprep.subr.bf16.mxu1 %v2530_v17 }
 0x336   :  { %2293 = vmatpush3.bf16.msra.mxu0 %v2531_v19  ;;  %p2685_p0 = por %p2684_p13, %p2683_p12 }
 0x337   :  { %2391 = vmatpush3.bf16.msra.mxu1 %v2530_v17  ;;  %2294 = vmatprep.subr.bf16.mxu0 %v2532_v20 }
 0x338   :  { %2392 = vmatprep.subr.bf16.mxu1 %v2533_v55  ;;  %p2686_p1 = pnand %p2685_p0, %p2679_p11 }
 0x33a   :  { %2295 = vmatpush3.bf16.msra.mxu0 %v2534_v1 }
 0x33b   :  { %2393 = vmatpush3.bf16.msra.mxu1 %v2533_v55  ;;  %2296 = vmatprep.subr.bf16.mxu0 %v2535_v3 }
 0x33c   :  { %2394 = vmatprep.subr.bf16.mxu1 %v2536_v21 }
 0x33e   :  { %2297 = vmatpush3.bf16.msra.mxu0 %v2537_v56 }
 0x33f   :  { %2395 = vmatpush3.bf16.msra.mxu1 %v2536_v21  ;;  %2298 = vmatprep.subr.bf16.mxu0 %v2538_v57 }
 0x340   :  { %2396 = vmatprep.subr.bf16.mxu1 %v2539_v22 }
 0x342   :  { %2299 = vmatpush3.bf16.msra.mxu0 %v2540_v23 }
 0x343   :  { %2397 = vmatpush3.bf16.msra.mxu1 %v2539_v22  ;;  %2300 = vmatprep.subr.bf16.mxu0 %v2541_v24 }
 0x344   :  { %2398 = vmatprep.subr.bf16.mxu1 %v2542_v25 }
 0x346   :  { %2301 = vmatpush3.bf16.msra.mxu0 %v2543_v30 }
 0x347   :  { %2399 = vmatpush3.bf16.msra.mxu1 %v2542_v25 }
 0x349   :  { %1870 = vmatmul.mubr.bf16.vlgmr.msra.gmra.mxu0 %v1254_v39 }
 0x34a   :  { %2401 = vmatmul.mubr.bf16.vlgmr.msra.gmra.mxu1 %v1281_v41  ;;  %1877 = vmatprep.mubr.bf16.mxu0 %v1273_v48 }
 0x351   :  { %1878 = vmatmul.mubr.bf16.gmra.mxu0 %v1257_v14 }
 0x3e9   :  { %v2246_v43 = vpop.f32.mrf.mxu0 }
 0x3ea   :  { %v2274_v4 = vpop.f32.mrf.mxu1 }
 0x3eb   :  { %v2247_v44 = vpop.f32.mrf.mxu0 }
 0x3ec   :  { %v2275_v45 = vpop.f32.mrf.mxu1  ;;  %v2248_v62 = vadd.f32 %v2247_v44, %v2246_v43 }
 0x3ed   :  { %v2249_v2 = vpop.f32.mrf.mxu0  ;;  %v2276_v7 = vadd.f32 %v2275_v45, %v2274_v4 }
 0x3ee   :  { %v2277_v46 = vpop.f32.mrf.mxu1  ;;  %v1774_v63 = vadd.f32 %v2248_v62, %v2059_v32 }
 0x3ef   :  { %v2250_v47 = vpop.f32.mrf.mxu0 }
 0x3f0   :  { %v2278_v49 = vpop.f32.mrf.mxu1  ;;  %v2251_v0 = vadd.f32 %v2250_v47, %v2249_v2  ;;  %v1823_v11 = vadd.f32 %v2276_v7, %v1774_v63 }
 0x3f1   :  { %v2252_v50 = vpop.f32.mrf.mxu0  ;;  %v2279_v19 = vadd.f32 %v2278_v49, %v2277_v46 }
 0x3f2   :  { %v2280_v51 = vpop.f32.mrf.mxu1  ;;  %v1777_v15 = vadd.f32 %v2251_v0, %v2059_v32 }
 0x3f3   :  { %v2253_v52 = vpop.f32.mrf.mxu0 }
 0x3f4   :  { %v2281_v59 = vpop.f32.mrf.mxu1  ;;  %v2254_v9 = vadd.f32 %v2253_v52, %v2252_v50  ;;  %v1826_v3 = vadd.f32 %v2279_v19, %v1777_v15 }
 0x3f5   :  { %v2255_v60 = vpop.f32.mrf.mxu0  ;;  %v2282_v22 = vadd.f32 %v2281_v59, %v2280_v51 }
 0x3f6   :  { %v2283_v31 = vpop.f32.mrf.mxu1  ;;  %v1782_v20 = vadd.f32 %v2254_v9, %v2059_v32 }
 0x3f7   :  { %v2256_v61 = vpop.f32.mrf.mxu0 }
 0x3f8   :  { %v2284_v5 = vpop.f32.mrf.mxu1  ;;  %v2257_v21 = vadd.f32 %v2256_v61, %v2255_v60  ;;  %v1831_v26 = vadd.f32 %v2282_v22, %v1782_v20 }
 0x3f9   :  { %v2285_v34 = vadd.f32 %v2284_v5, %v2283_v31 }
 0x3fa   :  { %v1785_v29 = vadd.f32 %v2257_v21, %v2059_v32 }
 0x3fc   :  { %v1834_v41 = vadd.f32 %v2285_v34, %v1785_v29 }
 0x409   :  { %v2302_v6 = vpop.f32.mrf.mxu0 }
 0x40a   :  { %v2402_v8 = vpop.f32.mrf.mxu1 }
 0x40b   :  { %v2303_v10 = vpop.f32.mrf.mxu0 }
 0x40c   :  { %v2304_v16 = vadd.f32 %v2303_v10, %v2302_v6  ;;  %v1920_v17 = vpop.f32.mrf.mxu1 }
 0x40d   :  { %v2305_v18 = vpop.f32.mrf.mxu0 }
 0x40e   :  { %v1872_v58 = vadd.f32 %v2304_v16, %v1823_v11  ;;  %v2403_v55 = vpop.f32.mrf.mxu1 }
 0x40f   :  { %v2306_v1 = vpop.f32.mrf.mxu0 }
 0x410   :  { %v1921_v56 = vadd.f32 %v1920_v17, %v1872_v58  ;;  %v2307_v57 = vadd.f32 %v2306_v1, %v2305_v18  ;;  %v1923_v27 = vpop.f32.mrf.mxu1 }
 0x411   :  { %v2308_v23 = vpop.f32.mrf.mxu0 }
 0x412   :  { %v1935_v24 = vsub.f32 0.0, %v1921_v56  ;;  %v1875_v25 = vadd.f32 %v2307_v57, %v1826_v3 }
 0x413   :  { %v2309_v28 = vpop.f32.mrf.mxu0 }
 0x414   :  { %v1939_v30 = vmul.f32 1.442695, %v1935_v24  ;;  %v1924_v53 = vadd.f32 %v1923_v27, %v1875_v25  ;;  %v2310_v54 = vadd.f32 %v2309_v28, %v2308_v23 }
 0x415   :  { %v2311_v33 = vpop.f32.mrf.mxu0 }
 0x416   :  { %2562 = vpow2.f32 %v1939_v30  ;;  %v1936_v35 = vsub.f32 0.0, %v1924_v53  ;;  %v1880_v36 = vadd.f32 %v2310_v54, %v1831_v26 }
 0x417   :  { %v2312_v39 = vpop.f32.mrf.mxu0 }
 0x418   :  { %v1941_v48 = vmul.f32 1.442695, %v1936_v35  ;;  %v1929_v12 = vadd.f32 %v2402_v8, %v1880_v36  ;;  %v2313_v13 = vadd.f32 %v2312_v39, %v2311_v33 }
 0x41a   :  { %2564 = vpow2.f32 %v1941_v48  ;;  %v1937_v14 = vsub.f32 0.0, %v1929_v12  ;;  %v1883_v43 = vadd.f32 %v2313_v13, %v1834_v41 }
 0x41c   :  { %v1943_v4 = vmul.f32 1.442695, %v1937_v14  ;;  %v1932_v44 = vadd.f32 %v2403_v55, %v1883_v43 }
 0x41e   :  { %2566 = vpow2.f32 %v1943_v4  ;;  %v1938_v45 = vsub.f32 0.0, %v1932_v44 }
 0x420   :  { %v1945_v2 = vmul.f32 1.442695, %v1938_v45 }
 0x422   :  { %2568 = vpow2.f32 %v1945_v2 }
 0x423   :  { %v2563_v46 = vpop.eup %2562 }
 0x424   :  { %v1947_v47 = vadd.f32 1.0, %v2563_v46 }
 0x426   :  { %2570 = vrcp.f32 %v1947_v47 }
 0x427   :  { %v2565_v49 = vpop.eup %2564 }
 0x428   :  { %v1948_v50 = vadd.f32 1.0, %v2565_v49 }
 0x42a   :  { %2572 = vrcp.f32 %v1948_v50 }
 0x42b   :  { %v2567_v51 = vpop.eup %2566 }
 0x42c   :  { %v1949_v52 = vadd.f32 1.0, %v2567_v51 }
 0x42e   :  { %2574 = vrcp.f32 %v1949_v52 }
 0x42f   :  { %v2569_v59 = vpop.eup %2568 }
 0x430   :  { %v1950_v60 = vadd.f32 1.0, %v2569_v59 }
 0x432   :  { %2576 = vrcp.f32 %v1950_v60 }
 0x433   :  { %v2571_v62 = vpop.eup %2570 }
 0x434   :  { %v1955_v31 = vmul.f32 %v2571_v62, %v2819_v40 }
 0x436   :  { %1959 = vst [vmem:[#allocation11] sm:$0xff] %v1955_v31 }
 0x437   :  { %v2573_v32 = vpop.eup %2572 }
 0x438   :  { %v1956_v61 = vmul.f32 %v2573_v32, %v2823_v42 }
 0x43a   :  { %1960 = vst [vmem:[#allocation11 + $0x8] sm:$0xff] %v1956_v61 }
 0x43b   :  { %v2575_v63 = vpop.eup %2574 }
 0x43c   :  { %v1957_v0 = vmul.f32 %v2575_v63, %v2815_v37 }
 0x43e   :  { %1961 = vst [vmem:[#allocation11 + $0x10] sm:$0xff] %v1957_v0 }
 0x43f   :  { %v2577_v5 = vpop.eup %2576 }
 0x440   :  { %v1958_v6 = vmul.f32 %v2577_v5, %v2817_v38 }
 0x442   :  { %1962 = vst [vmem:[#allocation11 + $0x18] sm:$0xff] %v1958_v6 }
 0x443   :  { %2689 = shalt.err (!%p2686_p1)
}
 0x444   :  { %s2714_s17 = smov 128   ;;  %s2715_s18 = smov 8  }
 0x445   :  { %1974 = dma.vmem_to_hbm [thread:$0]  %s1969_s15, 512, %s2996_s9, [#allocation4], %s2714_s17, %s2714_s17, %s2715_s18  }
 0x446   :  { %2704 = dma.done.wait [#allocation4], 512  }
 0x447   :  { %2705 = vsyncadd [#allocation4], 4294966784 }
 0x448   :  { %1978 = vsyncpa [#allocation3], 1 }
 0x449   :  { %1979 = vsyncpa [#allocation6], 1 }
 0x44a   :  { %1980 = vsyncpa [#allocation9], 1 }
 0x44b   :  { %1981 = vsyncpa [#allocation4], 1 }

</bundles_post_ra>
